<compile_context>
chip_gen: v6e
topology: v6e:2x2x1
jax: 0.10.0
libtpu: 0.0.40
codegen_flags: <defaults>
</compile_context>

<pallas_src>
import math
import functools

import jax
import jax.numpy as jnp
from jax.experimental import pallas as pl
from jax.experimental.pallas import tpu as pltpu


# ----------------------------- Pallas kernels ------------------------------

def _gemm_bias_relu_kernel(a_ref, w_ref, b_ref, o_ref):
    # a: (tm, K) bf16 row tile, w: (K, N) bf16 resident, b: (1, N) f32.
    acc = jnp.dot(a_ref[...], w_ref[...], preferred_element_type=jnp.float32)
    acc = jnp.maximum(acc + b_ref[...], 0.0)
    o_ref[...] = acc.astype(o_ref.dtype)


def _linear_pe_kernel(a_ref, w_ref, b_ref, pe_ref, o_ref, *, xscale):
    # a: (1, tt, K) bf16, w: (K, N) bf16, b: (1, N) f32, pe: (tt, N) f32.
    acc = jnp.dot(a_ref[0], w_ref[...], preferred_element_type=jnp.float32)
    acc = (acc + b_ref[...]) * xscale + pe_ref[...]
    o_ref[0] = acc.astype(o_ref.dtype)


# ----------------------------- Pallas wrappers ------------------------------

def _round_up(x, m):
    return ((x + m - 1) // m) * m


def _row_tile(m, base):
    """Pick a row tile (multiple of 8) and the padded extent it divides."""
    m8 = _round_up(m, 8)
    tm = m8 if m8 <= base else base
    return tm, _round_up(m, tm)


def gemm_bias_relu(a, w, bias, *, out_dtype=jnp.bfloat16, tm_base=512):
    """a: (M, K) bf16, w: (K, N) bf16, bias: (1, N) f32 -> (M, N) out_dtype."""
    M, K = a.shape
    _, N = w.shape
    tm, Mp = _row_tile(M, tm_base)
    if Mp != M:
        a = jnp.pad(a, ((0, Mp - M), (0, 0)))
    out_bytes = jnp.dtype(out_dtype).itemsize
    out = pl.pallas_call(
        _gemm_bias_relu_kernel,
        out_shape=jax.ShapeDtypeStruct((Mp, N), out_dtype),
        grid_spec=pltpu.PrefetchScalarGridSpec(
            num_scalar_prefetch=0,
            grid=(Mp // tm,),
            in_specs=[
                pl.BlockSpec((tm, K), lambda i: (i, 0)),   # streamed row tiles
                pl.BlockSpec((K, N), lambda i: (0, 0)),    # resident weights
                pl.BlockSpec((1, N), lambda i: (0, 0)),    # resident bias
            ],
            out_specs=pl.BlockSpec((tm, N), lambda i: (i, 0)),
        ),
        compiler_params=pltpu.CompilerParams(
            dimension_semantics=("parallel",),
            vmem_limit_bytes=48 * 1024 * 1024,
        ),
        cost_estimate=pl.CostEstimate(
            flops=2 * Mp * K * N,
            transcendentals=0,
            bytes_accessed=Mp * K * 2 + K * N * 2 + N * 4 + Mp * N * out_bytes,
        ),
    )(a, w, bias)
    return out[:M] if Mp != M else out


def linear_pe(h, w, bias, pe, *, xscale, tt_base=256):
    """h: (B, T, K) bf16, w: (K, N) bf16, bias: (1, N) f32, pe: (T, N) f32."""
    B, T, K = h.shape
    _, N = w.shape
    tt, Tp = _row_tile(T, tt_base)
    if Tp != T:
        h = jnp.pad(h, ((0, 0), (0, Tp - T), (0, 0)))
        pe = jnp.pad(pe, ((0, Tp - T), (0, 0)))
    out = pl.pallas_call(
        functools.partial(_linear_pe_kernel, xscale=xscale),
        out_shape=jax.ShapeDtypeStruct((B, Tp, N), jnp.float32),
        grid_spec=pltpu.PrefetchScalarGridSpec(
            num_scalar_prefetch=0,
            grid=(B, Tp // tt),
            in_specs=[
                pl.BlockSpec((1, tt, K), lambda b, t: (b, t, 0)),
                pl.BlockSpec((K, N), lambda b, t: (0, 0)),   # resident weights
                pl.BlockSpec((1, N), lambda b, t: (0, 0)),   # resident bias
                pl.BlockSpec((tt, N), lambda b, t: (t, 0)),  # PE: time tile only
            ],
            out_specs=pl.BlockSpec((1, tt, N), lambda b, t: (b, t, 0)),
        ),
        compiler_params=pltpu.CompilerParams(
            dimension_semantics=("parallel", "parallel"),
            vmem_limit_bytes=48 * 1024 * 1024,
        ),
        cost_estimate=pl.CostEstimate(
            flops=2 * B * Tp * K * N,
            transcendentals=0,
            bytes_accessed=B * Tp * K * 2 + K * N * 2 + N * 4
                           + Tp * N * 4 + B * Tp * N * 4,
        ),
    )(h, w, bias, pe)
    return out[:, :T, :] if Tp != T else out


# ------------------------------- JAX glue ----------------------------------

def _im2col_nhwc(x, k=3, s=2):
    """x: (B, H, W, C) -> (B*Ho*Wo, k*k*C) patches in (kh, kw, c) column order."""
    B, H, W, C = x.shape
    Ho = (H - k) // s + 1
    Wo = (W - k) // s + 1
    cols = [x[:, dh:dh + s * Ho:s, dw:dw + s * Wo:s, :]
            for dh in range(k) for dw in range(k)]
    p = jnp.concatenate(cols, axis=-1)               # (B, Ho, Wo, k*k*C)
    # TODO(synk): fuse im2col into the Pallas kernel (overlapping row windows)
    # to avoid materializing the ~2.25x patch matrix in HBM.
    return p.reshape(B * Ho * Wo, k * k * C), Ho, Wo


def conv2d_s2_relu(x, w, b):
    """NHWC 3x3/stride-2 conv + ReLU. x: (B,H,W,Cin) bf16; w: (Cout,Cin,3,3)."""
    B = x.shape[0]
    Cout = w.shape[0]
    patches, Ho, Wo = _im2col_nhwc(x)
    # (Cout, Cin, kh, kw) -> (kh, kw, cin, cout) to match (kh, kw, c) patches.
    wmat = w.transpose(2, 3, 1, 0).reshape(-1, Cout).astype(jnp.bfloat16)
    out = gemm_bias_relu(patches, wmat, b.reshape(1, Cout).astype(jnp.float32))
    return out.reshape(B, Ho, Wo, Cout)              # NHWC, no transpose back


def sinusoidal_pe(length, d_model):
    position = jnp.arange(length, dtype=jnp.float32)[:, None]
    div_term = jnp.exp(
        jnp.arange(0, d_model, 2, dtype=jnp.float32)
        * -(math.log(10000.0) / d_model))
    pe = jnp.zeros((length, d_model), dtype=jnp.float32)
    pe = pe.at[:, 0::2].set(jnp.sin(position * div_term))
    pe = pe.at[:, 1::2].set(jnp.cos(position * div_term)[:, : d_model // 2])
    return pe


def init_params(key, idim, odim):
    ks = jax.random.split(key, 4)

    def conv_init(k, cout, cin):
        kw, kb = jax.random.split(k)
        bound = 1.0 / math.sqrt(cin * 9)
        w = jax.random.uniform(kw, (cout, cin, 3, 3), jnp.float32, -bound, bound)
        b = jax.random.uniform(kb, (cout,), jnp.float32, -bound, bound)
        return w, b

    f_out = ((((idim - 1) // 2 - 1) // 2 - 1) // 2)
    lin_in = odim * f_out
    kw, kb = jax.random.split(ks[3])
    bound = 1.0 / math.sqrt(lin_in)
    return {
        "conv1": conv_init(ks[0], odim, 1),
        "conv2": conv_init(ks[1], odim, odim),
        "conv3": conv_init(ks[2], odim, odim),
        "lin_w": jax.random.uniform(kw, (odim, lin_in), jnp.float32, -bound, bound),
        "lin_b": jax.random.uniform(kb, (odim,), jnp.float32, -bound, bound),
    }


def conv2d_subsampling8_forward(params, x, x_mask, odim):
    """x: (B, T, idim) float32; x_mask: (B, 1, T) bool or None."""
    h = x[:, :, :, None].astype(jnp.bfloat16)        # (B, T, idim, 1) NHWC
    h = conv2d_s2_relu(h, *params["conv1"])
    h = conv2d_s2_relu(h, *params["conv2"])
    h = conv2d_s2_relu(h, *params["conv3"])
    b, t, f, c = h.shape                              # (B, T3, F3, Cout) NHWC
    rows = h.reshape(b, t, f * c)                     # feature order (f, c)

    # PyTorch Linear expects (c, f)-ordered features; permute its columns once
    # to the NHWC (f, c) ordering instead of transposing the activations.
    lin_w = params["lin_w"].reshape(odim, c, f).transpose(2, 1, 0)
    lin_w = lin_w.reshape(f * c, odim).astype(jnp.bfloat16)

    pe = sinusoidal_pe(t, odim)                       # (T3, odim), shared by batch
    out = linear_pe(rows, lin_w,
                    params["lin_b"].reshape(1, odim).astype(jnp.float32),
                    pe, xscale=math.sqrt(odim))
    # TODO(synk): dropout inside PositionalEncoding omitted (eval-mode identity).

    if x_mask is None:
        return out, None
    m = x_mask[:, :, :-2:2][:, :, :-2:2][:, :, :-2:2]
    return out, m


if __name__ == "__main__":
    B, T, IDIM, ODIM = 2, 32, 40, 32
    key = jax.random.PRNGKey(0)
    kx, kp = jax.random.split(key)

    x = jax.random.normal(kx, (B, T, IDIM), dtype=jnp.float32)
    x_mask = jnp.ones((B, 1, T), dtype=bool)
    params = init_params(kp, IDIM, ODIM)

    fwd = jax.jit(functools.partial(conv2d_subsampling8_forward, odim=ODIM))
    out, mask = fwd(params, x, x_mask)
    out = jax.block_until_ready(out)
    mask = jax.block_until_ready(mask)

    t3 = ((((T - 1) // 2 - 1) // 2 - 1) // 2)
    assert out.shape == (B, t3, ODIM), out.shape
    assert mask.shape == (B, 1, t3), mask.shape
    assert bool(jnp.all(jnp.isfinite(out)))
    print("KERNEL_OK")
</pallas_src>

<mosaic_0001>
module attributes {stable_mosaic.version = 11 : i64} {
  func.func @_gemm_bias_relu_kernel(%arg0: i32, %arg1: memref<512x9xbf16, #tpu.memory_space<vmem>>, %arg2: memref<9x32xbf16, #tpu.memory_space<vmem>>, %arg3: memref<1x32xf32, #tpu.memory_space<vmem>>, %arg4: memref<512x32xbf16, #tpu.memory_space<vmem>>) attributes {dimension_semantics = [#tpu.dimension_semantics<parallel>], iteration_bounds = array<i64: 2>, scalar_prefetch = 0 : i64, scratch_operands = 0 : i64, tpu.core_type = #tpu.core_type<tc>, window_params = [{transform_indices = @transform_0, window_bounds = array<i64: 512, 9>}, {pipeline_mode = #tpu.pipeline_mode<synchronous>, transform_indices = @transform_1, window_bounds = array<i64: 9, 32>}, {pipeline_mode = #tpu.pipeline_mode<synchronous>, transform_indices = @transform_2, window_bounds = array<i64: 1, 32>}, {transform_indices = @transform_3, window_bounds = array<i64: 512, 32>}]} {
    %c0 = arith.constant 0 : index
    %c0_0 = arith.constant 0 : index
    %0 = vector.load %arg1[%c0, %c0_0] : memref<512x9xbf16, #tpu.memory_space<vmem>>, vector<512x9xbf16>
    %c0_1 = arith.constant 0 : index
    %c0_2 = arith.constant 0 : index
    %1 = vector.load %arg2[%c0_1, %c0_2] : memref<9x32xbf16, #tpu.memory_space<vmem>>, vector<9x32xbf16>
    %cst = arith.constant dense<0.000000e+00> : vector<512x32xf32>
    %2 = tpu.matmul %0, %1, %cst {dimension_numbers = #tpu.dot_dimension_numbers<[1], [0], [0], [1], [0, 0, 1, 1], [], []>} : vector<512x9xbf16>, vector<9x32xbf16>, vector<512x32xf32> -> vector<512x32xf32>
    %c0_3 = arith.constant 0 : index
    %c0_4 = arith.constant 0 : index
    %3 = vector.load %arg3[%c0_3, %c0_4] : memref<1x32xf32, #tpu.memory_space<vmem>>, vector<1x32xf32>
    %4 = vector.broadcast %3 : vector<1x32xf32> to vector<512x32xf32>
    %5 = arith.addf %2, %4 : vector<512x32xf32>
    %cst_5 = arith.constant 0.000000e+00 : f32
    %6 = vector.broadcast %cst_5 : f32 to vector<512x32xf32>
    %7 = arith.maximumf %5, %6 : vector<512x32xf32>
    %8 = arith.truncf %7 : vector<512x32xf32> to vector<512x32xbf16>
    %c0_6 = arith.constant 0 : index
    %c0_7 = arith.constant 0 : index
    %9 = vector.load %arg4[%c0_6, %c0_7] : memref<512x32xbf16, #tpu.memory_space<vmem>>, vector<512x32xbf16>
    tpu.vector_store %arg4[%c0_6, %c0_7], %8 {strides = array<i32>} : memref<512x32xbf16, #tpu.memory_space<vmem>>, vector<512x32xbf16>,
    return
  }
  func.func @transform_0(%arg0: i32) -> (i32, i32) {
    %c0_i32 = arith.constant 0 : i32
    %c0_i32_0 = arith.constant 0 : i32
    return %arg0, %c0_i32 : i32, i32
  }
  func.func @transform_1(%arg0: i32) -> (i32, i32) {
    %c0_i32 = arith.constant 0 : i32
    %c0_i32_0 = arith.constant 0 : i32
    %c0_i32_1 = arith.constant 0 : i32
    return %c0_i32, %c0_i32_0 : i32, i32
  }
  func.func @transform_2(%arg0: i32) -> (i32, i32) {
    %c0_i32 = arith.constant 0 : i32
    %c0_i32_0 = arith.constant 0 : i32
    %c0_i32_1 = arith.constant 0 : i32
    return %c0_i32, %c0_i32_0 : i32, i32
  }
  func.func @transform_3(%arg0: i32) -> (i32, i32) {
    %c0_i32 = arith.constant 0 : i32
    %c0_i32_0 = arith.constant 0 : i32
    return %arg0, %c0_i32 : i32, i32
  }
}

module attributes {stable_mosaic.version = 11 : i64} {
  func.func @_gemm_bias_relu_kernel(%arg0: i32, %arg1: memref<128x288xbf16, #tpu.memory_space<vmem>>, %arg2: memref<288x32xbf16, #tpu.memory_space<vmem>>, %arg3: memref<1x32xf32, #tpu.memory_space<vmem>>, %arg4: memref<128x32xbf16, #tpu.memory_space<vmem>>) attributes {dimension_semantics = [#tpu.dimension_semantics<parallel>], iteration_bounds = array<i64: 1>, scalar_prefetch = 0 : i64, scratch_operands = 0 : i64, tpu.core_type = #tpu.core_type<tc>, window_params = [{transform_indices = @transform_0, window_bounds = array<i64: 128, 288>}, {pipeline_mode = #tpu.pipeline_mode<synchronous>, transform_indices = @transform_1, window_bounds = array<i64: 288, 32>}, {pipeline_mode = #tpu.pipeline_mode<synchronous>, transform_indices = @transform_2, window_bounds = array<i64: 1, 32>}, {transform_indices = @transform_3, window_bounds = array<i64: 128, 32>}]} {
    %c0 = arith.constant 0 : index
    %c0_0 = arith.constant 0 : index
    %0 = vector.load %arg1[%c0, %c0_0] : memref<128x288xbf16, #tpu.memory_space<vmem>>, vector<128x288xbf16>
    %c0_1 = arith.constant 0 : index
    %c0_2 = arith.constant 0 : index
    %1 = vector.load %arg2[%c0_1, %c0_2] : memref<288x32xbf16, #tpu.memory_space<vmem>>, vector<288x32xbf16>
    %cst = arith.constant dense<0.000000e+00> : vector<128x32xf32>
    %2 = tpu.matmul %0, %1, %cst {dimension_numbers = #tpu.dot_dimension_numbers<[1], [0], [0], [1], [0, 0, 1, 1], [], []>} : vector<128x288xbf16>, vector<288x32xbf16>, vector<128x32xf32> -> vector<128x32xf32>
    %c0_3 = arith.constant 0 : index
    %c0_4 = arith.constant 0 : index
    %3 = vector.load %arg3[%c0_3, %c0_4] : memref<1x32xf32, #tpu.memory_space<vmem>>, vector<1x32xf32>
    %4 = vector.broadcast %3 : vector<1x32xf32> to vector<128x32xf32>
    %5 = arith.addf %2, %4 : vector<128x32xf32>
    %cst_5 = arith.constant 0.000000e+00 : f32
    %6 = vector.broadcast %cst_5 : f32 to vector<128x32xf32>
    %7 = arith.maximumf %5, %6 : vector<128x32xf32>
    %8 = arith.truncf %7 : vector<128x32xf32> to vector<128x32xbf16>
    %c0_6 = arith.constant 0 : index
    %c0_7 = arith.constant 0 : index
    %9 = vector.load %arg4[%c0_6, %c0_7] : memref<128x32xbf16, #tpu.memory_space<vmem>>, vector<128x32xbf16>
    tpu.vector_store %arg4[%c0_6, %c0_7], %8 {strides = array<i32>} : memref<128x32xbf16, #tpu.memory_space<vmem>>, vector<128x32xbf16>,
    return
  }
  func.func @transform_0(%arg0: i32) -> (i32, i32) {
    %c0_i32 = arith.constant 0 : i32
    %c0_i32_0 = arith.constant 0 : i32
    return %arg0, %c0_i32 : i32, i32
  }
  func.func @transform_1(%arg0: i32) -> (i32, i32) {
    %c0_i32 = arith.constant 0 : i32
    %c0_i32_0 = arith.constant 0 : i32
    %c0_i32_1 = arith.constant 0 : i32
    return %c0_i32, %c0_i32_0 : i32, i32
  }
  func.func @transform_2(%arg0: i32) -> (i32, i32) {
    %c0_i32 = arith.constant 0 : i32
    %c0_i32_0 = arith.constant 0 : i32
    %c0_i32_1 = arith.constant 0 : i32
    return %c0_i32, %c0_i32_0 : i32, i32
  }
  func.func @transform_3(%arg0: i32) -> (i32, i32) {
    %c0_i32 = arith.constant 0 : i32
    %c0_i32_0 = arith.constant 0 : i32
    return %arg0, %c0_i32 : i32, i32
  }
}

module attributes {stable_mosaic.version = 11 : i64} {
  func.func @_gemm_bias_relu_kernel(%arg0: i32, %arg1: memref<24x288xbf16, #tpu.memory_space<vmem>>, %arg2: memref<288x32xbf16, #tpu.memory_space<vmem>>, %arg3: memref<1x32xf32, #tpu.memory_space<vmem>>, %arg4: memref<24x32xbf16, #tpu.memory_space<vmem>>) attributes {dimension_semantics = [#tpu.dimension_semantics<parallel>], iteration_bounds = array<i64: 1>, scalar_prefetch = 0 : i64, scratch_operands = 0 : i64, tpu.core_type = #tpu.core_type<tc>, window_params = [{transform_indices = @transform_0, window_bounds = array<i64: 24, 288>}, {pipeline_mode = #tpu.pipeline_mode<synchronous>, transform_indices = @transform_1, window_bounds = array<i64: 288, 32>}, {pipeline_mode = #tpu.pipeline_mode<synchronous>, transform_indices = @transform_2, window_bounds = array<i64: 1, 32>}, {transform_indices = @transform_3, window_bounds = array<i64: 24, 32>}]} {
    %c0 = arith.constant 0 : index
    %c0_0 = arith.constant 0 : index
    %0 = vector.load %arg1[%c0, %c0_0] : memref<24x288xbf16, #tpu.memory_space<vmem>>, vector<24x288xbf16>
    %c0_1 = arith.constant 0 : index
    %c0_2 = arith.constant 0 : index
    %1 = vector.load %arg2[%c0_1, %c0_2] : memref<288x32xbf16, #tpu.memory_space<vmem>>, vector<288x32xbf16>
    %cst = arith.constant dense<0.000000e+00> : vector<24x32xf32>
    %2 = tpu.matmul %0, %1, %cst {dimension_numbers = #tpu.dot_dimension_numbers<[1], [0], [0], [1], [0, 0, 1, 1], [], []>} : vector<24x288xbf16>, vector<288x32xbf16>, vector<24x32xf32> -> vector<24x32xf32>
    %c0_3 = arith.constant 0 : index
    %c0_4 = arith.constant 0 : index
    %3 = vector.load %arg3[%c0_3, %c0_4] : memref<1x32xf32, #tpu.memory_space<vmem>>, vector<1x32xf32>
    %4 = vector.broadcast %3 : vector<1x32xf32> to vector<24x32xf32>
    %5 = arith.addf %2, %4 : vector<24x32xf32>
    %cst_5 = arith.constant 0.000000e+00 : f32
    %6 = vector.broadcast %cst_5 : f32 to vector<24x32xf32>
    %7 = arith.maximumf %5, %6 : vector<24x32xf32>
    %8 = arith.truncf %7 : vector<24x32xf32> to vector<24x32xbf16>
    %c0_6 = arith.constant 0 : index
    %c0_7 = arith.constant 0 : index
    %9 = vector.load %arg4[%c0_6, %c0_7] : memref<24x32xbf16, #tpu.memory_space<vmem>>, vector<24x32xbf16>
    tpu.vector_store %arg4[%c0_6, %c0_7], %8 {strides = array<i32>} : memref<24x32xbf16, #tpu.memory_space<vmem>>, vector<24x32xbf16>,
    return
  }
  func.func @transform_0(%arg0: i32) -> (i32, i32) {
    %c0_i32 = arith.constant 0 : i32
    %c0_i32_0 = arith.constant 0 : i32
    return %arg0, %c0_i32 : i32, i32
  }
  func.func @transform_1(%arg0: i32) -> (i32, i32) {
    %c0_i32 = arith.constant 0 : i32
    %c0_i32_0 = arith.constant 0 : i32
    %c0_i32_1 = arith.constant 0 : i32
    return %c0_i32, %c0_i32_0 : i32, i32
  }
  func.func @transform_2(%arg0: i32) -> (i32, i32) {
    %c0_i32 = arith.constant 0 : i32
    %c0_i32_0 = arith.constant 0 : i32
    %c0_i32_1 = arith.constant 0 : i32
    return %c0_i32, %c0_i32_0 : i32, i32
  }
  func.func @transform_3(%arg0: i32) -> (i32, i32) {
    %c0_i32 = arith.constant 0 : i32
    %c0_i32_0 = arith.constant 0 : i32
    return %arg0, %c0_i32 : i32, i32
  }
}

module attributes {stable_mosaic.version = 11 : i64} {
  func.func @_linear_pe_kernel(%arg0: i32, %arg1: i32, %arg2: memref<1x8x128xbf16, #tpu.memory_space<vmem>>, %arg3: memref<128x32xbf16, #tpu.memory_space<vmem>>, %arg4: memref<1x32xf32, #tpu.memory_space<vmem>>, %arg5: memref<8x32xf32, #tpu.memory_space<vmem>>, %arg6: memref<1x8x32xf32, #tpu.memory_space<vmem>>) attributes {dimension_semantics = [#tpu.dimension_semantics<parallel>, #tpu.dimension_semantics<parallel>], iteration_bounds = array<i64: 2, 1>, scalar_prefetch = 0 : i64, scratch_operands = 0 : i64, tpu.core_type = #tpu.core_type<tc>, window_params = [{transform_indices = @transform_0, window_bounds = array<i64: 1, 8, 128>}, {pipeline_mode = #tpu.pipeline_mode<synchronous>, transform_indices = @transform_1, window_bounds = array<i64: 128, 32>}, {pipeline_mode = #tpu.pipeline_mode<synchronous>, transform_indices = @transform_2, window_bounds = array<i64: 1, 32>}, {transform_indices = @transform_3, window_bounds = array<i64: 8, 32>}, {transform_indices = @transform_4, window_bounds = array<i64: 1, 8, 32>}]} {
    %c0 = arith.constant 0 : index
    %c0_0 = arith.constant 0 : index
    %c0_1 = arith.constant 0 : index
    %0 = vector.load %arg2[%c0, %c0_0, %c0_1] : memref<1x8x128xbf16, #tpu.memory_space<vmem>>, vector<1x8x128xbf16>
    %1 = vector.shape_cast %0 : vector<1x8x128xbf16> to vector<8x128xbf16>
    %c0_2 = arith.constant 0 : index
    %c0_3 = arith.constant 0 : index
    %2 = vector.load %arg3[%c0_2, %c0_3] : memref<128x32xbf16, #tpu.memory_space<vmem>>, vector<128x32xbf16>
    %cst = arith.constant dense<0.000000e+00> : vector<8x32xf32>
    %3 = tpu.matmul %1, %2, %cst {dimension_numbers = #tpu.dot_dimension_numbers<[1], [0], [0], [1], [0, 0, 1, 1], [], []>} : vector<8x128xbf16>, vector<128x32xbf16>, vector<8x32xf32> -> vector<8x32xf32>
    %c0_4 = arith.constant 0 : index
    %c0_5 = arith.constant 0 : index
    %4 = vector.load %arg4[%c0_4, %c0_5] : memref<1x32xf32, #tpu.memory_space<vmem>>, vector<1x32xf32>
    %5 = vector.broadcast %4 : vector<1x32xf32> to vector<8x32xf32>
    %6 = arith.addf %3, %5 : vector<8x32xf32>
    %cst_6 = arith.constant 5.65685415 : f32
    %7 = vector.broadcast %cst_6 : f32 to vector<8x32xf32>
    %8 = arith.mulf %6, %7 : vector<8x32xf32>
    %c0_7 = arith.constant 0 : index
    %c0_8 = arith.constant 0 : index
    %9 = vector.load %arg5[%c0_7, %c0_8] : memref<8x32xf32, #tpu.memory_space<vmem>>, vector<8x32xf32>
    %10 = arith.addf %8, %9 : vector<8x32xf32>
    %c0_9 = arith.constant 0 : index
    %c0_10 = arith.constant 0 : index
    %c0_11 = arith.constant 0 : index
    %11 = vector.load %arg6[%c0_9, %c0_10, %c0_11] : memref<1x8x32xf32, #tpu.memory_space<vmem>>, vector<1x8x32xf32>
    %12 = vector.shape_cast %11 : vector<1x8x32xf32> to vector<8x32xf32>
    %13 = vector.shape_cast %10 : vector<8x32xf32> to vector<1x8x32xf32>
    tpu.vector_store %arg6[%c0_9, %c0_10, %c0_11], %13 {strides = array<i32>} : memref<1x8x32xf32, #tpu.memory_space<vmem>>, vector<1x8x32xf32>,
    return
  }
  func.func @transform_0(%arg0: i32, %arg1: i32) -> (i32, i32, i32) {
    %c0_i32 = arith.constant 0 : i32
    %c0_i32_0 = arith.constant 0 : i32
    return %arg0, %arg1, %c0_i32 : i32, i32, i32
  }
  func.func @transform_1(%arg0: i32, %arg1: i32) -> (i32, i32) {
    %c0_i32 = arith.constant 0 : i32
    %c0_i32_0 = arith.constant 0 : i32
    %c0_i32_1 = arith.constant 0 : i32
    return %c0_i32, %c0_i32_0 : i32, i32
  }
  func.func @transform_2(%arg0: i32, %arg1: i32) -> (i32, i32) {
    %c0_i32 = arith.constant 0 : i32
    %c0_i32_0 = arith.constant 0 : i32
    %c0_i32_1 = arith.constant 0 : i32
    return %c0_i32, %c0_i32_0 : i32, i32
  }
  func.func @transform_3(%arg0: i32, %arg1: i32) -> (i32, i32) {
    %c0_i32 = arith.constant 0 : i32
    %c0_i32_0 = arith.constant 0 : i32
    return %arg1, %c0_i32 : i32, i32
  }
  func.func @transform_4(%arg0: i32, %arg1: i32) -> (i32, i32, i32) {
    %c0_i32 = arith.constant 0 : i32
    %c0_i32_0 = arith.constant 0 : i32
    return %arg0, %arg1, %c0_i32 : i32, i32, i32
  }
}

</mosaic_0001>

<bundles_post_ra>
// kernel: conv2d_subsampling8_forward.4
= control target key start
LH: loop header
LB: loop body
LE: loop exit
PB: predicated region body
PF: predicated region fallthrough
CT: control target
= control target key end

     0   :  { %8 = vsyncpa [#allocation3], 0  ;;  %s1693_s12 = smov 0   ;;  %s2003_s0 = inlined_call_operand.vmem [shape: bf16[1024,9], index: 0, kind: input, shape index: {}]   ;;  %s2004_s1 = inlined_call_operand.vmem [shape: bf16[9,32], index: 1, kind: input, shape index: {}]   ;;  %s2005_s2 = inlined_call_operand.hbm [shape: f32[1,32], index: 2, kind: input, shape index: {}]   ;;  %s2006_s3 = inlined_call_operand.vmem [shape: bf16[1024,32], index: 3, kind: output, shape index: {}]  }
   0x1 LB: > { %s1272_s13 = sadd.s32 4294967295, %s1669_s12   ;;  %p1274_p0 = scmp.ge.s32.totalorder %s1669_s12, 1  ;;  %s1669_s12 = sphi %s1693_s12, %s14_s12  }
   0x2   : > { %p113_p1 = scmp.lt.s32.totalorder %s1669_s12, 3  ;;  %p1705_p3 = scmp.eq.s32.totalorder %s1272_s13, 0 }
   0x3   : > { %s1671_s16 = smov [#allocation2]  }
   0x4   : > { %p1701_p2 = pnand %p1274_p0, %p113_p1  ;;  %s129_s17 = sshll.u32 %s1671_s16, 4  ;;  %s130_s17 = int_to_ptr.vmem [resolvable:$true] %s129_s17 }
   0x5   : > { %s1644_s18 = scalar_lea.vmem %s130_s17, 16  ;;  %s1651_s19 = scalar_lea.vmem %s130_s17, 32 }
   0x6   : > { %p1584_p4 = pneg %p1701_p2  ;;  %p1645_p7 = scmp.ne.s32.totalorder %s130_s17, %s1644_s18 }
   0x7   : > { %p1652_p10 = scmp.lt.s32.totalorder %s130_s17, %s130_s17  ;;  %p1653_p11 = scmp.lt.s32.totalorder %s1651_s19, %s1644_s18 }
   0x8   : > { %p1585_p5 = pnand %p1705_p3, %p1584_p4 }
   0x9   : > { %p1654_p12 = por %p1653_p11, %p1652_p10 }
   0xa   : > { %p1635_p6 = pneg %p1585_p5 }
   0xc   : > { %p1647_p8 = pnand %p1645_p7, %p1635_p6 }
   0xe   : > { %p1648_p9 = pneg %p1647_p8 }
  0x10   : > { %p1655_p13 = pnand %p1654_p12, %p1648_p9 }
  0x12   : > { %1658 = shalt.err (!%p1655_p13)
}
  0x13   : > { %1587 = dma.hbm_to_vmem [thread:$0]  (!%p1585_p5), %s2005_s2, 16, %s130_s17, [#allocation3]  }
  0x14   : > { %151 = sbr.rel (%p1701_p2) target bundleno = 297 (0x129), region = 32 }
  0x19   : > { %1664 = dma.done.wait (%p1705_p3), [#allocation3], 16  }
  0x1a   : > { %1666 = vsyncadd (%p1705_p3), [#allocation3], 4294967280  ;;  %vm523_vm0 = vcmask 1043456   ;;  %s1279_s22 = sshll.u32 %s1272_s13, 6  ;;  %vm524_vm1 = vcmask 1044480   ;;  %v1672_v0 = vmov 65535  }
  0x1b   : > { %p176_p0 = scmp.lt.s32.totalorder %s1279_s22, 127  ;;  %v525_v1 = vsel %vm523_vm0, 4294967295, %v1672_v0  ;;  %vm426_vm2 = vcmask 72704   ;;  %v1600_v3 = vld [vmem:[%s2004_s1] sm:$0x1f]   ;;  %vm1139_vm3 = vcmask 257024  }
  0x1c   : > { %v526_v2 = vsel %vm524_vm1, %v525_v1, 0  ;;  %v1799_v37 = vld [vmem:[#allocation2] ss:$0 sm:$0xff] }
  0x1d   : > { %s2010_s22 = smov (!%p176_p0, %s1279_s22), 127  ;;  %v528_v5 = vand.u32 %v1600_v3, %v526_v2 }
  0x1e   : > { %s1280_s23 = sshll.u32 %s2010_s22, 2 }
  0x1f   : > { %s1730_s26 = scalar_lea.vmem %s2003_s0, %s1280_s23  ;;  %1512 = vmatprep.subr.bf16.mxu0 %v528_v5  ;;  %1578 = vmatprep.subr.bf16.mxu1 %v528_v5  ;;  %s1810_s4 = scalar_lea.vmem %s2006_s3, %s1280_s23 }
  0x20   : > { %v1601_v4 = vld [vmem:[%s1730_s26] sm:$0xff]   ;;  %v1603_v7 = vld [vmem:[%s1730_s26 + $0x8] sm:$0xff]   ;;  %1513 = vmatpush3.bf16.msra.mxu0 %v528_v5  ;;  %1579 = vmatpush3.bf16.msra.mxu1 %v528_v5  ;;  %v1605_v9 = vld [vmem:[%s1730_s26 + $0x10] sm:$0xff]  }
  0x21   : > { %v1602_v6 = vld [vmem:[%s1730_s26 + $0x80] sm:$0xff]   ;;  %1514 = vmatprep.mubr.msk.bf16.mxu0 %vm426_vm2, %v1601_v4  ;;  %v1604_v8 = vld [vmem:[%s1730_s26 + $0x88] sm:$0xff]   ;;  %v1606_v10 = vld [vmem:[%s1730_s26 + $0x90] sm:$0xff]  }
  0x22   : > { %1546 = vmatprep.mubr.msk.bf16.mxu1 %vm426_vm2, %v1602_v6  ;;  %v1607_v11 = vld [vmem:[%s1730_s26 + $0x18] sm:$0xff]   ;;  %v1609_v13 = vld [vmem:[%s1730_s26 + $0x20] sm:$0xff]   ;;  %v1611_v15 = vld [vmem:[%s1730_s26 + $0x28] sm:$0xff]  }
  0x23   : > { %1515 = vmatmul.mubr.msk.bf16.vlgmr.msra.gmra.mxu0 %vm426_vm2, %v1603_v7  ;;  %1547 = vmatmul.mubr.msk.bf16.vlgmr.msra.gmra.mxu1 %vm426_vm2, %v1604_v8  ;;  %v1608_v12 = vld [vmem:[%s1730_s26 + $0x98] sm:$0xff]   ;;  %v1610_v14 = vld [vmem:[%s1730_s26 + $0xa0] sm:$0xff]   ;;  %v1612_v16 = vld [vmem:[%s1730_s26 + $0xa8] sm:$0xff]  }
  0x24   : > { %1518 = vmatprep.mubr.msk.bf16.mxu0 %vm426_vm2, %v1605_v9  ;;  %1550 = vmatprep.mubr.msk.bf16.mxu1 %vm426_vm2, %v1606_v10  ;;  %v1613_v17 = vld [vmem:[%s1730_s26 + $0x30] sm:$0xff]   ;;  %v1615_v19 = vld [vmem:[%s1730_s26 + $0x38] sm:$0xff]   ;;  %v1617_v21 = vld [vmem:[%s1730_s26 + $0x40] sm:$0xff]  }
  0x25   : > { %v1614_v18 = vld [vmem:[%s1730_s26 + $0xb0] sm:$0xff]   ;;  %v1616_v20 = vld [vmem:[%s1730_s26 + $0xb8] sm:$0xff]   ;;  %v1618_v22 = vld [vmem:[%s1730_s26 + $0xc0] sm:$0xff]  }
  0x26   : > { %v1619_v23 = vld [vmem:[%s1730_s26 + $0x48] sm:$0xff]   ;;  %v1621_v25 = vld [vmem:[%s1730_s26 + $0x50] sm:$0xff]   ;;  %v1623_v27 = vld [vmem:[%s1730_s26 + $0x58] sm:$0xff]  }
  0x27   : > { %v1620_v24 = vld [vmem:[%s1730_s26 + $0xc8] sm:$0xff]   ;;  %v1622_v26 = vld [vmem:[%s1730_s26 + $0xd0] sm:$0xff]   ;;  %v1624_v28 = vld [vmem:[%s1730_s26 + $0xd8] sm:$0xff]  }
  0x28   : > { %v1625_v29 = vld [vmem:[%s1730_s26 + $0x60] sm:$0xff]   ;;  %v1627_v31 = vld [vmem:[%s1730_s26 + $0x68] sm:$0xff]   ;;  %v1629_v33 = vld [vmem:[%s1730_s26 + $0x70] sm:$0xff]  }
  0x29   : > { %v1626_v30 = vld [vmem:[%s1730_s26 + $0xe0] sm:$0xff]   ;;  %v1628_v32 = vld [vmem:[%s1730_s26 + $0xe8] sm:$0xff]   ;;  %v1630_v34 = vld [vmem:[%s1730_s26 + $0xf0] sm:$0xff]  }
  0x2a   : > { %v1631_v35 = vld [vmem:[%s1730_s26 + $0x78] sm:$0xff]  }
  0x2b   : > { %1519 = vmatmul.mubr.msk.bf16.gmra.mxu0 %vm426_vm2, %v1607_v11  ;;  %1551 = vmatmul.mubr.msk.bf16.gmra.mxu1 %vm426_vm2, %v1608_v12  ;;  %v1632_v36 = vld [vmem:[%s1730_s26 + $0xf8] sm:$0xff]  }
  0x2c   : > { %1522 = vmatprep.mubr.msk.bf16.mxu0 %vm426_vm2, %v1609_v13  ;;  %1554 = vmatprep.mubr.msk.bf16.mxu1 %vm426_vm2, %v1610_v14 }
  0x33   : > { %1523 = vmatmul.mubr.msk.bf16.gmra.mxu0 %vm426_vm2, %v1611_v15  ;;  %1555 = vmatmul.mubr.msk.bf16.gmra.mxu1 %vm426_vm2, %v1612_v16 }
  0x34   : > { %1526 = vmatprep.mubr.msk.bf16.mxu0 %vm426_vm2, %v1613_v17  ;;  %1558 = vmatprep.mubr.msk.bf16.mxu1 %vm426_vm2, %v1614_v18 }
  0x3b   : > { %1527 = vmatmul.mubr.msk.bf16.gmra.mxu0 %vm426_vm2, %v1615_v19  ;;  %1559 = vmatmul.mubr.msk.bf16.gmra.mxu1 %vm426_vm2, %v1616_v20 }
  0x3c   : > { %1530 = vmatprep.mubr.msk.bf16.mxu0 %vm426_vm2, %v1617_v21  ;;  %1562 = vmatprep.mubr.msk.bf16.mxu1 %vm426_vm2, %v1618_v22 }
  0x43   : > { %1531 = vmatmul.mubr.msk.bf16.gmra.mxu0 %vm426_vm2, %v1619_v23  ;;  %1563 = vmatmul.mubr.msk.bf16.gmra.mxu1 %vm426_vm2, %v1620_v24 }
  0x44   : > { %1534 = vmatprep.mubr.msk.bf16.mxu0 %vm426_vm2, %v1621_v25  ;;  %1566 = vmatprep.mubr.msk.bf16.mxu1 %vm426_vm2, %v1622_v26 }
  0x4b   : > { %1535 = vmatmul.mubr.msk.bf16.gmra.mxu0 %vm426_vm2, %v1623_v27  ;;  %1567 = vmatmul.mubr.msk.bf16.gmra.mxu1 %vm426_vm2, %v1624_v28 }
  0x4c   : > { %1538 = vmatprep.mubr.msk.bf16.mxu0 %vm426_vm2, %v1625_v29  ;;  %1570 = vmatprep.mubr.msk.bf16.mxu1 %vm426_vm2, %v1626_v30 }
  0x53   : > { %1539 = vmatmul.mubr.msk.bf16.gmra.mxu0 %vm426_vm2, %v1627_v31  ;;  %1571 = vmatmul.mubr.msk.bf16.gmra.mxu1 %vm426_vm2, %v1628_v32 }
  0x54   : > { %1542 = vmatprep.mubr.msk.bf16.mxu0 %vm426_vm2, %v1629_v33  ;;  %1574 = vmatprep.mubr.msk.bf16.mxu1 %vm426_vm2, %v1630_v34 }
  0x5b   : > { %1543 = vmatmul.mubr.msk.bf16.gmra.mxu0 %vm426_vm2, %v1631_v35  ;;  %1575 = vmatmul.mubr.msk.bf16.gmra.mxu1 %vm426_vm2, %v1632_v36 }
  0xe3   : > { %v1516_v38 = vpop.f32.mrf.mxu0  ;;  %v1548_v39 = vpop.f32.mrf.mxu1 }
  0xe4   : > { %v573_v40 = vadd.f32 %v1516_v38, %v1799_v37  ;;  %v701_v41 = vadd.f32 %v1548_v39, %v1799_v37 }
  0xe5   : > { %v564_v42 = vpop.f32.mrf.mxu0  ;;  %v692_v43 = vpop.f32.mrf.mxu1 }
  0xe6   : > { %v821_v44 = vmax.f32 %v573_v40, 0.0  ;;  %v853_v45 = vmax.f32 %v701_v41, 0.0  ;;  %v565_v46 = vadd.f32 %v1799_v37, %v564_v42  ;;  %v693_v47 = vadd.f32 %v1799_v37, %v692_v43 }
  0xe7   : > { %v1517_v48 = vpop.f32.mrf.mxu0  ;;  %v1549_v49 = vpop.f32.mrf.mxu1 }
  0xe8   : > { %v1417_v50 = vpack.c.bf16 %v821_v44, %v821_v44  ;;  %v1449_v51 = vpack.c.bf16 %v853_v45, %v853_v45  ;;  %v819_v52 = vmax.f32 %v565_v46, 0.0  ;;  %v851_v53 = vmax.f32 %v693_v47, 0.0 }
  0xe9   : > { %v576_v54 = vadd.f32 %v1517_v48, %v1799_v37  ;;  %v704_v55 = vadd.f32 %v1549_v49, %v1799_v37  ;;  %v567_v56 = vpop.f32.mrf.mxu0  ;;  %v695_v57 = vpop.f32.mrf.mxu1 }
  0xea   : > { %1142 = vst.msk [vmem:[%s1810_s4 + $0x8] sm:$0xf] %vm1139_vm3, %v1417_v50  ;;  %1174 = vst.msk [vmem:[%s1810_s4 + $0x88] sm:$0xf] %vm1139_vm3, %v1449_v51  ;;  %v1415_v58 = vpack.c.bf16 %v819_v52, %v819_v52  ;;  %v1447_v59 = vpack.c.bf16 %v851_v53, %v851_v53  ;;  %v568_v60 = vadd.f32 %v1799_v37, %v567_v56 }
  0xeb   : > { %v696_v61 = vadd.f32 %v1799_v37, %v695_v57  ;;  %v822_v62 = vmax.f32 %v576_v54, 0.0  ;;  %v854_v63 = vmax.f32 %v704_v55, 0.0  ;;  %v1520_v0 = vpop.f32.mrf.mxu0  ;;  %v1552_v1 = vpop.f32.mrf.mxu1 }
  0xec   : > { %1140 = vst.msk [vmem:[%s1810_s4] sm:$0xf] %vm1139_vm3, %v1415_v58  ;;  %1172 = vst.msk [vmem:[%s1810_s4 + $0x80] sm:$0xf] %vm1139_vm3, %v1447_v59  ;;  %v820_v2 = vmax.f32 %v568_v60, 0.0  ;;  %v589_v4 = vadd.f32 %v1520_v0, %v1799_v37  ;;  %v717_v5 = vadd.f32 %v1552_v1, %v1799_v37 }
  0xed   : > { %v852_v3 = vmax.f32 %v696_v61, 0.0  ;;  %v1418_v6 = vpack.c.bf16 %v822_v62, %v822_v62  ;;  %v1450_v7 = vpack.c.bf16 %v854_v63, %v854_v63  ;;  %v580_v8 = vpop.f32.mrf.mxu0  ;;  %v708_v9 = vpop.f32.mrf.mxu1 }
  0xee   : > { %v1416_v10 = vpack.c.bf16 %v820_v2, %v820_v2  ;;  %v825_v12 = vmax.f32 %v589_v4, 0.0  ;;  %v857_v13 = vmax.f32 %v717_v5, 0.0  ;;  %v581_v14 = vadd.f32 %v1799_v37, %v580_v8 }
  0xef   : > { %v1448_v11 = vpack.c.bf16 %v852_v3, %v852_v3  ;;  %1143 = vst.msk [vmem:[%s1810_s4 + $0xc] sm:$0xf] %vm1139_vm3, %v1418_v6  ;;  %1175 = vst.msk [vmem:[%s1810_s4 + $0x8c] sm:$0xf] %vm1139_vm3, %v1450_v7  ;;  %v709_v15 = vadd.f32 %v1799_v37, %v708_v9  ;;  %v1521_v16 = vpop.f32.mrf.mxu0  ;;  %v1553_v17 = vpop.f32.mrf.mxu1 }
  0xf0   : > { %1141 = vst.msk [vmem:[%s1810_s4 + $0x4] sm:$0xf] %vm1139_vm3, %v1416_v10  ;;  %v1421_v18 = vpack.c.bf16 %v825_v12, %v825_v12  ;;  %v1453_v19 = vpack.c.bf16 %v857_v13, %v857_v13  ;;  %v592_v20 = vadd.f32 %v1521_v16, %v1799_v37  ;;  %v720_v21 = vadd.f32 %v1553_v17, %v1799_v37 }
  0xf1   : > { %1173 = vst.msk [vmem:[%s1810_s4 + $0x84] sm:$0xf] %vm1139_vm3, %v1448_v11  ;;  %v823_v22 = vmax.f32 %v581_v14, 0.0  ;;  %v855_v23 = vmax.f32 %v709_v15, 0.0  ;;  %v583_v24 = vpop.f32.mrf.mxu0  ;;  %v711_v25 = vpop.f32.mrf.mxu1 }
  0xf2   : > { %1146 = vst.msk [vmem:[%s1810_s4 + $0x18] sm:$0xf] %vm1139_vm3, %v1421_v18  ;;  %1178 = vst.msk [vmem:[%s1810_s4 + $0x98] sm:$0xf] %vm1139_vm3, %v1453_v19  ;;  %v826_v26 = vmax.f32 %v592_v20, 0.0  ;;  %v858_v27 = vmax.f32 %v720_v21, 0.0  ;;  %v584_v28 = vadd.f32 %v1799_v37, %v583_v24  ;;  %v712_v29 = vadd.f32 %v1799_v37, %v711_v25 }
  0xf3   : > { %v1419_v30 = vpack.c.bf16 %v823_v22, %v823_v22  ;;  %v1451_v31 = vpack.c.bf16 %v855_v23, %v855_v23  ;;  %v1524_v32 = vpop.f32.mrf.mxu0  ;;  %v1556_v33 = vpop.f32.mrf.mxu1 }
  0xf4   : > { %v1422_v34 = vpack.c.bf16 %v826_v26, %v826_v26  ;;  %v1454_v35 = vpack.c.bf16 %v858_v27, %v858_v27  ;;  %v824_v36 = vmax.f32 %v584_v28, 0.0  ;;  %v856_v38 = vmax.f32 %v712_v29, 0.0 }
  0xf5   : > { %1144 = vst.msk [vmem:[%s1810_s4 + $0x10] sm:$0xf] %vm1139_vm3, %v1419_v30  ;;  %1176 = vst.msk [vmem:[%s1810_s4 + $0x90] sm:$0xf] %vm1139_vm3, %v1451_v31  ;;  %v605_v39 = vadd.f32 %v1524_v32, %v1799_v37  ;;  %v733_v40 = vadd.f32 %v1556_v33, %v1799_v37  ;;  %v596_v41 = vpop.f32.mrf.mxu0  ;;  %v724_v42 = vpop.f32.mrf.mxu1 }
  0xf6   : > { %1147 = vst.msk [vmem:[%s1810_s4 + $0x1c] sm:$0xf] %vm1139_vm3, %v1422_v34  ;;  %1179 = vst.msk [vmem:[%s1810_s4 + $0x9c] sm:$0xf] %vm1139_vm3, %v1454_v35  ;;  %v1420_v43 = vpack.c.bf16 %v824_v36, %v824_v36  ;;  %v1452_v44 = vpack.c.bf16 %v856_v38, %v856_v38  ;;  %v597_v45 = vadd.f32 %v1799_v37, %v596_v41 }
  0xf7   : > { %v725_v46 = vadd.f32 %v1799_v37, %v724_v42  ;;  %v829_v47 = vmax.f32 %v605_v39, 0.0  ;;  %v861_v48 = vmax.f32 %v733_v40, 0.0  ;;  %v1525_v49 = vpop.f32.mrf.mxu0  ;;  %v1557_v50 = vpop.f32.mrf.mxu1 }
  0xf8   : > { %1145 = vst.msk [vmem:[%s1810_s4 + $0x14] sm:$0xf] %vm1139_vm3, %v1420_v43  ;;  %1177 = vst.msk [vmem:[%s1810_s4 + $0x94] sm:$0xf] %vm1139_vm3, %v1452_v44  ;;  %v827_v51 = vmax.f32 %v597_v45, 0.0  ;;  %v608_v53 = vadd.f32 %v1525_v49, %v1799_v37  ;;  %v736_v54 = vadd.f32 %v1557_v50, %v1799_v37 }
  0xf9   : > { %v859_v52 = vmax.f32 %v725_v46, 0.0  ;;  %v1425_v55 = vpack.c.bf16 %v829_v47, %v829_v47  ;;  %v1457_v56 = vpack.c.bf16 %v861_v48, %v861_v48  ;;  %v599_v57 = vpop.f32.mrf.mxu0  ;;  %v727_v58 = vpop.f32.mrf.mxu1 }
  0xfa   : > { %v1423_v59 = vpack.c.bf16 %v827_v51, %v827_v51  ;;  %v830_v61 = vmax.f32 %v608_v53, 0.0  ;;  %v862_v62 = vmax.f32 %v736_v54, 0.0  ;;  %v600_v63 = vadd.f32 %v1799_v37, %v599_v57 }
  0xfb   : > { %v1455_v60 = vpack.c.bf16 %v859_v52, %v859_v52  ;;  %1150 = vst.msk [vmem:[%s1810_s4 + $0x28] sm:$0xf] %vm1139_vm3, %v1425_v55  ;;  %1182 = vst.msk [vmem:[%s1810_s4 + $0xa8] sm:$0xf] %vm1139_vm3, %v1457_v56  ;;  %v728_v0 = vadd.f32 %v1799_v37, %v727_v58  ;;  %v1528_v1 = vpop.f32.mrf.mxu0  ;;  %v1560_v2 = vpop.f32.mrf.mxu1 }
  0xfc   : > { %1148 = vst.msk [vmem:[%s1810_s4 + $0x20] sm:$0xf] %vm1139_vm3, %v1423_v59  ;;  %v1426_v3 = vpack.c.bf16 %v830_v61, %v830_v61  ;;  %v1458_v4 = vpack.c.bf16 %v862_v62, %v862_v62  ;;  %v621_v5 = vadd.f32 %v1528_v1, %v1799_v37  ;;  %v749_v6 = vadd.f32 %v1560_v2, %v1799_v37 }
  0xfd   : > { %1180 = vst.msk [vmem:[%s1810_s4 + $0xa0] sm:$0xf] %vm1139_vm3, %v1455_v60  ;;  %v828_v7 = vmax.f32 %v600_v63, 0.0  ;;  %v860_v8 = vmax.f32 %v728_v0, 0.0  ;;  %v612_v9 = vpop.f32.mrf.mxu0  ;;  %v740_v10 = vpop.f32.mrf.mxu1 }
  0xfe   : > { %1151 = vst.msk [vmem:[%s1810_s4 + $0x2c] sm:$0xf] %vm1139_vm3, %v1426_v3  ;;  %1183 = vst.msk [vmem:[%s1810_s4 + $0xac] sm:$0xf] %vm1139_vm3, %v1458_v4  ;;  %v833_v11 = vmax.f32 %v621_v5, 0.0  ;;  %v865_v12 = vmax.f32 %v749_v6, 0.0  ;;  %v613_v13 = vadd.f32 %v1799_v37, %v612_v9  ;;  %v741_v14 = vadd.f32 %v1799_v37, %v740_v10 }
  0xff   : > { %v1424_v15 = vpack.c.bf16 %v828_v7, %v828_v7  ;;  %v1456_v16 = vpack.c.bf16 %v860_v8, %v860_v8  ;;  %v1529_v17 = vpop.f32.mrf.mxu0  ;;  %v1561_v18 = vpop.f32.mrf.mxu1 }
 0x100   : > { %v1429_v19 = vpack.c.bf16 %v833_v11, %v833_v11  ;;  %v1461_v20 = vpack.c.bf16 %v865_v12, %v865_v12  ;;  %v831_v21 = vmax.f32 %v613_v13, 0.0  ;;  %v863_v22 = vmax.f32 %v741_v14, 0.0 }
 0x101   : > { %1149 = vst.msk [vmem:[%s1810_s4 + $0x24] sm:$0xf] %vm1139_vm3, %v1424_v15  ;;  %1181 = vst.msk [vmem:[%s1810_s4 + $0xa4] sm:$0xf] %vm1139_vm3, %v1456_v16  ;;  %v624_v23 = vadd.f32 %v1529_v17, %v1799_v37  ;;  %v752_v24 = vadd.f32 %v1561_v18, %v1799_v37  ;;  %v615_v25 = vpop.f32.mrf.mxu0  ;;  %v743_v26 = vpop.f32.mrf.mxu1 }
 0x102   : > { %1154 = vst.msk [vmem:[%s1810_s4 + $0x38] sm:$0xf] %vm1139_vm3, %v1429_v19  ;;  %1186 = vst.msk [vmem:[%s1810_s4 + $0xb8] sm:$0xf] %vm1139_vm3, %v1461_v20  ;;  %v1427_v27 = vpack.c.bf16 %v831_v21, %v831_v21  ;;  %v1459_v28 = vpack.c.bf16 %v863_v22, %v863_v22  ;;  %v616_v29 = vadd.f32 %v1799_v37, %v615_v25 }
 0x103   : > { %v744_v30 = vadd.f32 %v1799_v37, %v743_v26  ;;  %v834_v31 = vmax.f32 %v624_v23, 0.0  ;;  %v866_v32 = vmax.f32 %v752_v24, 0.0  ;;  %v1532_v33 = vpop.f32.mrf.mxu0  ;;  %v1564_v34 = vpop.f32.mrf.mxu1 }
 0x104   : > { %1152 = vst.msk [vmem:[%s1810_s4 + $0x30] sm:$0xf] %vm1139_vm3, %v1427_v27  ;;  %1184 = vst.msk [vmem:[%s1810_s4 + $0xb0] sm:$0xf] %vm1139_vm3, %v1459_v28  ;;  %v832_v35 = vmax.f32 %v616_v29, 0.0  ;;  %v637_v38 = vadd.f32 %v1532_v33, %v1799_v37  ;;  %v765_v39 = vadd.f32 %v1564_v34, %v1799_v37 }
 0x105   : > { %v864_v36 = vmax.f32 %v744_v30, 0.0  ;;  %v1430_v40 = vpack.c.bf16 %v834_v31, %v834_v31  ;;  %v1462_v41 = vpack.c.bf16 %v866_v32, %v866_v32  ;;  %v628_v42 = vpop.f32.mrf.mxu0  ;;  %v756_v43 = vpop.f32.mrf.mxu1 }
 0x106   : > { %v1428_v44 = vpack.c.bf16 %v832_v35, %v832_v35  ;;  %v837_v46 = vmax.f32 %v637_v38, 0.0  ;;  %v869_v47 = vmax.f32 %v765_v39, 0.0  ;;  %v629_v48 = vadd.f32 %v1799_v37, %v628_v42 }
 0x107   : > { %v1460_v45 = vpack.c.bf16 %v864_v36, %v864_v36  ;;  %1155 = vst.msk [vmem:[%s1810_s4 + $0x3c] sm:$0xf] %vm1139_vm3, %v1430_v40  ;;  %1187 = vst.msk [vmem:[%s1810_s4 + $0xbc] sm:$0xf] %vm1139_vm3, %v1462_v41  ;;  %v757_v49 = vadd.f32 %v1799_v37, %v756_v43  ;;  %v1533_v50 = vpop.f32.mrf.mxu0  ;;  %v1565_v51 = vpop.f32.mrf.mxu1 }
 0x108   : > { %1153 = vst.msk [vmem:[%s1810_s4 + $0x34] sm:$0xf] %vm1139_vm3, %v1428_v44  ;;  %v1433_v52 = vpack.c.bf16 %v837_v46, %v837_v46  ;;  %v1465_v53 = vpack.c.bf16 %v869_v47, %v869_v47  ;;  %v640_v54 = vadd.f32 %v1533_v50, %v1799_v37  ;;  %v768_v55 = vadd.f32 %v1565_v51, %v1799_v37 }
 0x109   : > { %1185 = vst.msk [vmem:[%s1810_s4 + $0xb4] sm:$0xf] %vm1139_vm3, %v1460_v45  ;;  %v835_v56 = vmax.f32 %v629_v48, 0.0  ;;  %v867_v57 = vmax.f32 %v757_v49, 0.0  ;;  %v631_v58 = vpop.f32.mrf.mxu0  ;;  %v759_v59 = vpop.f32.mrf.mxu1 }
 0x10a   : > { %1158 = vst.msk [vmem:[%s1810_s4 + $0x48] sm:$0xf] %vm1139_vm3, %v1433_v52  ;;  %1190 = vst.msk [vmem:[%s1810_s4 + $0xc8] sm:$0xf] %vm1139_vm3, %v1465_v53  ;;  %v838_v60 = vmax.f32 %v640_v54, 0.0  ;;  %v870_v61 = vmax.f32 %v768_v55, 0.0  ;;  %v632_v62 = vadd.f32 %v1799_v37, %v631_v58  ;;  %v760_v63 = vadd.f32 %v1799_v37, %v759_v59 }
 0x10b   : > { %v1431_v0 = vpack.c.bf16 %v835_v56, %v835_v56  ;;  %v1463_v1 = vpack.c.bf16 %v867_v57, %v867_v57  ;;  %v1536_v2 = vpop.f32.mrf.mxu0  ;;  %v1568_v3 = vpop.f32.mrf.mxu1 }
 0x10c   : > { %v1434_v4 = vpack.c.bf16 %v838_v60, %v838_v60  ;;  %v1466_v5 = vpack.c.bf16 %v870_v61, %v870_v61  ;;  %v836_v6 = vmax.f32 %v632_v62, 0.0  ;;  %v868_v7 = vmax.f32 %v760_v63, 0.0 }
 0x10d   : > { %1156 = vst.msk [vmem:[%s1810_s4 + $0x40] sm:$0xf] %vm1139_vm3, %v1431_v0  ;;  %1188 = vst.msk [vmem:[%s1810_s4 + $0xc0] sm:$0xf] %vm1139_vm3, %v1463_v1  ;;  %v653_v8 = vadd.f32 %v1536_v2, %v1799_v37  ;;  %v781_v9 = vadd.f32 %v1568_v3, %v1799_v37  ;;  %v644_v10 = vpop.f32.mrf.mxu0  ;;  %v772_v11 = vpop.f32.mrf.mxu1 }
 0x10e   : > { %1159 = vst.msk [vmem:[%s1810_s4 + $0x4c] sm:$0xf] %vm1139_vm3, %v1434_v4  ;;  %1191 = vst.msk [vmem:[%s1810_s4 + $0xcc] sm:$0xf] %vm1139_vm3, %v1466_v5  ;;  %v1432_v12 = vpack.c.bf16 %v836_v6, %v836_v6  ;;  %v1464_v13 = vpack.c.bf16 %v868_v7, %v868_v7  ;;  %v645_v14 = vadd.f32 %v1799_v37, %v644_v10 }
 0x10f   : > { %v773_v15 = vadd.f32 %v1799_v37, %v772_v11  ;;  %v841_v16 = vmax.f32 %v653_v8, 0.0  ;;  %v873_v17 = vmax.f32 %v781_v9, 0.0  ;;  %v1537_v18 = vpop.f32.mrf.mxu0  ;;  %v1569_v19 = vpop.f32.mrf.mxu1 }
 0x110   : > { %1157 = vst.msk [vmem:[%s1810_s4 + $0x44] sm:$0xf] %vm1139_vm3, %v1432_v12  ;;  %1189 = vst.msk [vmem:[%s1810_s4 + $0xc4] sm:$0xf] %vm1139_vm3, %v1464_v13  ;;  %v839_v20 = vmax.f32 %v645_v14, 0.0  ;;  %v656_v22 = vadd.f32 %v1537_v18, %v1799_v37  ;;  %v784_v23 = vadd.f32 %v1569_v19, %v1799_v37 }
 0x111   : > { %v871_v21 = vmax.f32 %v773_v15, 0.0  ;;  %v1437_v24 = vpack.c.bf16 %v841_v16, %v841_v16  ;;  %v1469_v25 = vpack.c.bf16 %v873_v17, %v873_v17  ;;  %v647_v26 = vpop.f32.mrf.mxu0  ;;  %v775_v27 = vpop.f32.mrf.mxu1 }
 0x112   : > { %v1435_v28 = vpack.c.bf16 %v839_v20, %v839_v20  ;;  %v842_v30 = vmax.f32 %v656_v22, 0.0  ;;  %v874_v31 = vmax.f32 %v784_v23, 0.0  ;;  %v648_v32 = vadd.f32 %v1799_v37, %v647_v26 }
 0x113   : > { %v1467_v29 = vpack.c.bf16 %v871_v21, %v871_v21  ;;  %1162 = vst.msk [vmem:[%s1810_s4 + $0x58] sm:$0xf] %vm1139_vm3, %v1437_v24  ;;  %1194 = vst.msk [vmem:[%s1810_s4 + $0xd8] sm:$0xf] %vm1139_vm3, %v1469_v25  ;;  %v776_v33 = vadd.f32 %v1799_v37, %v775_v27  ;;  %v1540_v34 = vpop.f32.mrf.mxu0  ;;  %v1572_v35 = vpop.f32.mrf.mxu1 }
 0x114   : > { %1160 = vst.msk [vmem:[%s1810_s4 + $0x50] sm:$0xf] %vm1139_vm3, %v1435_v28  ;;  %v1438_v36 = vpack.c.bf16 %v842_v30, %v842_v30  ;;  %v1470_v38 = vpack.c.bf16 %v874_v31, %v874_v31  ;;  %v669_v39 = vadd.f32 %v1540_v34, %v1799_v37  ;;  %v797_v40 = vadd.f32 %v1572_v35, %v1799_v37 }
 0x115   : > { %1192 = vst.msk [vmem:[%s1810_s4 + $0xd0] sm:$0xf] %vm1139_vm3, %v1467_v29  ;;  %v840_v41 = vmax.f32 %v648_v32, 0.0  ;;  %v872_v42 = vmax.f32 %v776_v33, 0.0  ;;  %v660_v43 = vpop.f32.mrf.mxu0  ;;  %v788_v44 = vpop.f32.mrf.mxu1 }
 0x116   : > { %1163 = vst.msk [vmem:[%s1810_s4 + $0x5c] sm:$0xf] %vm1139_vm3, %v1438_v36  ;;  %1195 = vst.msk [vmem:[%s1810_s4 + $0xdc] sm:$0xf] %vm1139_vm3, %v1470_v38  ;;  %v845_v45 = vmax.f32 %v669_v39, 0.0  ;;  %v877_v46 = vmax.f32 %v797_v40, 0.0  ;;  %v661_v47 = vadd.f32 %v1799_v37, %v660_v43  ;;  %v789_v48 = vadd.f32 %v1799_v37, %v788_v44 }
 0x117   : > { %v1436_v49 = vpack.c.bf16 %v840_v41, %v840_v41  ;;  %v1468_v50 = vpack.c.bf16 %v872_v42, %v872_v42  ;;  %v1541_v51 = vpop.f32.mrf.mxu0  ;;  %v1573_v52 = vpop.f32.mrf.mxu1 }
 0x118   : > { %v1441_v53 = vpack.c.bf16 %v845_v45, %v845_v45  ;;  %v1473_v54 = vpack.c.bf16 %v877_v46, %v877_v46  ;;  %v843_v55 = vmax.f32 %v661_v47, 0.0  ;;  %v875_v56 = vmax.f32 %v789_v48, 0.0 }
 0x119   : > { %1161 = vst.msk [vmem:[%s1810_s4 + $0x54] sm:$0xf] %vm1139_vm3, %v1436_v49  ;;  %1193 = vst.msk [vmem:[%s1810_s4 + $0xd4] sm:$0xf] %vm1139_vm3, %v1468_v50  ;;  %v672_v57 = vadd.f32 %v1541_v51, %v1799_v37  ;;  %v800_v58 = vadd.f32 %v1573_v52, %v1799_v37  ;;  %v663_v59 = vpop.f32.mrf.mxu0  ;;  %v791_v60 = vpop.f32.mrf.mxu1 }
 0x11a   : > { %1166 = vst.msk [vmem:[%s1810_s4 + $0x68] sm:$0xf] %vm1139_vm3, %v1441_v53  ;;  %1198 = vst.msk [vmem:[%s1810_s4 + $0xe8] sm:$0xf] %vm1139_vm3, %v1473_v54  ;;  %v1439_v61 = vpack.c.bf16 %v843_v55, %v843_v55  ;;  %v1471_v62 = vpack.c.bf16 %v875_v56, %v875_v56  ;;  %v664_v63 = vadd.f32 %v1799_v37, %v663_v59 }
 0x11b   : > { %v792_v0 = vadd.f32 %v1799_v37, %v791_v60  ;;  %v846_v1 = vmax.f32 %v672_v57, 0.0  ;;  %v878_v2 = vmax.f32 %v800_v58, 0.0  ;;  %v1544_v3 = vpop.f32.mrf.mxu0  ;;  %v1576_v4 = vpop.f32.mrf.mxu1 }
 0x11c   : > { %1164 = vst.msk [vmem:[%s1810_s4 + $0x60] sm:$0xf] %vm1139_vm3, %v1439_v61  ;;  %1196 = vst.msk [vmem:[%s1810_s4 + $0xe0] sm:$0xf] %vm1139_vm3, %v1471_v62  ;;  %v844_v5 = vmax.f32 %v664_v63, 0.0  ;;  %v685_v7 = vadd.f32 %v1544_v3, %v1799_v37  ;;  %v813_v8 = vadd.f32 %v1576_v4, %v1799_v37 }
 0x11d   : > { %v876_v6 = vmax.f32 %v792_v0, 0.0  ;;  %v1442_v9 = vpack.c.bf16 %v846_v1, %v846_v1  ;;  %v1474_v10 = vpack.c.bf16 %v878_v2, %v878_v2  ;;  %v676_v11 = vpop.f32.mrf.mxu0  ;;  %v804_v12 = vpop.f32.mrf.mxu1 }
 0x11e   : > { %v1440_v13 = vpack.c.bf16 %v844_v5, %v844_v5  ;;  %v849_v15 = vmax.f32 %v685_v7, 0.0  ;;  %v881_v16 = vmax.f32 %v813_v8, 0.0  ;;  %v677_v17 = vadd.f32 %v1799_v37, %v676_v11 }
 0x11f   : > { %v1472_v14 = vpack.c.bf16 %v876_v6, %v876_v6  ;;  %1167 = vst.msk [vmem:[%s1810_s4 + $0x6c] sm:$0xf] %vm1139_vm3, %v1442_v9  ;;  %1199 = vst.msk [vmem:[%s1810_s4 + $0xec] sm:$0xf] %vm1139_vm3, %v1474_v10  ;;  %v805_v18 = vadd.f32 %v1799_v37, %v804_v12  ;;  %v1545_v19 = vpop.f32.mrf.mxu0  ;;  %v1577_v20 = vpop.f32.mrf.mxu1 }
 0x120   : > { %1165 = vst.msk [vmem:[%s1810_s4 + $0x64] sm:$0xf] %vm1139_vm3, %v1440_v13  ;;  %v1445_v21 = vpack.c.bf16 %v849_v15, %v849_v15  ;;  %v1477_v22 = vpack.c.bf16 %v881_v16, %v881_v16  ;;  %v688_v23 = vadd.f32 %v1545_v19, %v1799_v37  ;;  %v816_v24 = vadd.f32 %v1577_v20, %v1799_v37 }
 0x121   : > { %1197 = vst.msk [vmem:[%s1810_s4 + $0xe4] sm:$0xf] %vm1139_vm3, %v1472_v14  ;;  %v847_v25 = vmax.f32 %v677_v17, 0.0  ;;  %v879_v26 = vmax.f32 %v805_v18, 0.0  ;;  %v679_v27 = vpop.f32.mrf.mxu0  ;;  %v807_v28 = vpop.f32.mrf.mxu1 }
 0x122   : > { %1170 = vst.msk [vmem:[%s1810_s4 + $0x78] sm:$0xf] %vm1139_vm3, %v1445_v21  ;;  %1202 = vst.msk [vmem:[%s1810_s4 + $0xf8] sm:$0xf] %vm1139_vm3, %v1477_v22  ;;  %v850_v29 = vmax.f32 %v688_v23, 0.0  ;;  %v882_v30 = vmax.f32 %v816_v24, 0.0  ;;  %v680_v31 = vadd.f32 %v1799_v37, %v679_v27  ;;  %v808_v32 = vadd.f32 %v1799_v37, %v807_v28 }
 0x123   : > { %v1443_v33 = vpack.c.bf16 %v847_v25, %v847_v25  ;;  %v1475_v34 = vpack.c.bf16 %v879_v26, %v879_v26 }
 0x124   : > { %v1446_v35 = vpack.c.bf16 %v850_v29, %v850_v29  ;;  %v1478_v36 = vpack.c.bf16 %v882_v30, %v882_v30  ;;  %v848_v38 = vmax.f32 %v680_v31, 0.0  ;;  %v880_v39 = vmax.f32 %v808_v32, 0.0 }
 0x125   : > { %1168 = vst.msk [vmem:[%s1810_s4 + $0x70] sm:$0xf] %vm1139_vm3, %v1443_v33  ;;  %1200 = vst.msk [vmem:[%s1810_s4 + $0xf0] sm:$0xf] %vm1139_vm3, %v1475_v34 }
 0x126   : > { %1171 = vst.msk [vmem:[%s1810_s4 + $0x7c] sm:$0xf] %vm1139_vm3, %v1446_v35  ;;  %1203 = vst.msk [vmem:[%s1810_s4 + $0xfc] sm:$0xf] %vm1139_vm3, %v1478_v36  ;;  %v1444_v40 = vpack.c.bf16 %v848_v38, %v848_v38  ;;  %v1476_v41 = vpack.c.bf16 %v880_v39, %v880_v39 }
 0x128   : > { %1169 = vst.msk [vmem:[%s1810_s4 + $0x74] sm:$0xf] %vm1139_vm3, %v1444_v40  ;;  %1201 = vst.msk [vmem:[%s1810_s4 + $0xf4] sm:$0xf] %vm1139_vm3, %v1476_v41 }
 0x129 PF: > { %s14_s12 = sadd.s32 1, %s1669_s12  }
 0x12a   : > { %p11_p1 = scmp.ge.s32.totalorder %s14_s12, 4  }
 0x12c   :  { %13 = sbr.rel (!%p11_p1) target bundleno = 1 (0x1), region = 67 }
 0x131   :  { %1226 = vsyncpa [#allocation3], 1 }
 0x132   :  { %1228 = vsyncpa [#allocation3 + $0x1], 1 }

// kernel: conv2d_subsampling8_forward.5
= control target key start
LH: loop header
LB: loop body
LE: loop exit
PB: predicated region body
PF: predicated region fallthrough
CT: control target
= control target key end

     0   :  { %vm318_vm0 = vcmask 261120   ;;  %vm617_vm1 = vcmask 257024   ;;  %s1144_s1 = inlined_call_operand.vmem [shape: bf16[288,32], index: 1, kind: input, shape index: {}]   ;;  %s1145_s0 = inlined_call_operand.vmem [shape: bf16[128,288], index: 0, kind: input, shape index: {}]   ;;  %s1146_s2 = inlined_call_operand.vmem [shape: f32[1,32], index: 2, kind: input, shape index: {}]   ;;  %s1147_s3 = inlined_call_operand.vmem [shape: bf16[128,32], index: 3, kind: output, shape index: {}]  }
   0x1   :  { %v831_v0 = vld [vmem:[%s1144_s1 + $0x78] sm:$0xff]   ;;  %v833_v2 = vld [vmem:[%s1144_s1 + $0x70] sm:$0xff]   ;;  %v835_v4 = vld [vmem:[%s1144_s1 + $0x68] sm:$0xff]  }
   0x2   :  { %v832_v1 = vld [vmem:[%s1144_s1 + $0x38] sm:$0xff]   ;;  %721 = vmatprep.subr.bf16.mxu0 %v831_v0  ;;  %815 = vmatprep.subr.bf16.mxu1 %v831_v0  ;;  %v834_v3 = vld [vmem:[%s1144_s1 + $0x30] sm:$0xff]   ;;  %v836_v5 = vld [vmem:[%s1144_s1 + $0x28] sm:$0xff]  }
   0x3   :  { %722 = vmatpush3.bf16.msra.mxu0 %v832_v1  ;;  %823 = vmatpush3.bf16.msra.mxu1 %v832_v1  ;;  %v837_v6 = vld [vmem:[%s1144_s1 + $0x60] sm:$0xff]   ;;  %v839_v8 = vld [vmem:[%s1144_s1 + $0x58] sm:$0xff]   ;;  %v841_v10 = vld [vmem:[%s1144_s1 + $0x50] sm:$0xff]  }
   0x4   :  { %723 = vmatprep.subr.bf16.mxu0 %v833_v2  ;;  %816 = vmatprep.subr.bf16.mxu1 %v833_v2  ;;  %v838_v7 = vld [vmem:[%s1144_s1 + $0x20] sm:$0xff]   ;;  %v840_v9 = vld [vmem:[%s1144_s1 + $0x18] sm:$0xff]   ;;  %v842_v13 = vld [vmem:[%s1144_s1 + $0x10] sm:$0xff]  }
   0x5   :  { %v849_v11 = vld [vmem:[%s1145_s0 + $0x4] ss:$12 sps:$4 sm:$0xff]   ;;  %v852_v12 = vld [vmem:[%s1145_s0 + $0x94] ss:$12 sps:$4 sm:$0xff]   ;;  %v843_v14 = vld [vmem:[%s1144_s1 + $0x48] sm:$0xff]  }
   0x6   :  { %375 = vmatprep.mubr.bf16.mxu0 %v849_v11  ;;  %423 = vmatprep.mubr.bf16.mxu1 %v852_v12  ;;  %v844_v15 = vld [vmem:[%s1144_s1 + $0x8] sm:$0xff]   ;;  %v845_v16 = vld [vmem:[%s1144_s1 + $0x40] sm:$0xff]   ;;  %v850_v20 = vld [vmem:[%s1145_s0 + $0x90] ss:$12 sps:$4 sm:$0xff]  }
   0x7   :  { %724 = vmatpush3.bf16.msra.mxu0 %v834_v3  ;;  %824 = vmatpush3.bf16.msra.mxu1 %v834_v3  ;;  %v846_v17 = vld [vmem:[%s1144_s1] sm:$0xff]   ;;  %v853_v19 = vld [vmem:[%s1144_s1 + $0x88] sm:$0xff]   ;;  %v864_v28 = vld [vmem:[%s1145_s0 + $0x30] ss:$12 sps:$4 sm:$0xff]  }
   0x8   :  { %725 = vmatprep.subr.bf16.mxu0 %v835_v4  ;;  %817 = vmatprep.subr.bf16.mxu1 %v835_v4  ;;  %v847_v18 = vld [vmem:[%s1145_s0] ss:$12 sps:$4 sm:$0xff]   ;;  %v854_v21 = vld [vmem:[%s1145_s0 + $0x1c] ss:$12 sps:$4 sm:$0xff]   ;;  %v858_v24 = vld [vmem:[%s1145_s0 + $0x18] ss:$12 sps:$4 sm:$0xff]  }
   0x9   :  { %v856_v22 = vld [vmem:[%s1145_s0 + $0xac] ss:$12 sps:$4 sm:$0xff]   ;;  %v860_v23 = vld [vmem:[%s1144_s1 + $0x80] sm:$0xff]   ;;  %v859_v25 = vld [vmem:[%s1145_s0 + $0xa8] ss:$12 sps:$4 sm:$0xff]  }
   0xa   :  { %v861_v26 = vld [vmem:[%s1145_s0 + $0x34] ss:$12 sps:$4 sm:$0xff]   ;;  %v866_v30 = vld [vmem:[%s1145_s0 + $0x4c] ss:$12 sps:$4 sm:$0xff]   ;;  %v870_v33 = vld [vmem:[%s1145_s0 + $0x50] ss:$12 sps:$4 sm:$0xff]  }
   0xb   :  { %726 = vmatpush3.bf16.msra.mxu0 %v836_v5  ;;  %825 = vmatpush3.bf16.msra.mxu1 %v836_v5  ;;  %v863_v27 = vld [vmem:[%s1145_s0 + $0x8] ss:$12 sps:$4 sm:$0xff]   ;;  %v865_v29 = vld [vmem:[%s1145_s0 + $0x20] ss:$12 sps:$4 sm:$0xff]   ;;  %v868_v31 = vld [vmem:[%s1145_s0 + $0x38] ss:$12 sps:$4 sm:$0xff]  }
   0xc   :  { %727 = vmatprep.subr.bf16.mxu0 %v837_v6  ;;  %818 = vmatprep.subr.bf16.mxu1 %v837_v6  ;;  %v869_v32 = vld [vmem:[%s1145_s0 + $0x48] ss:$12 sps:$4 sm:$0xff]   ;;  %v871_v34 = vld [vmem:[%s1145_s0 + $0x64] ss:$12 sps:$4 sm:$0xff]   ;;  %v874_v36 = vld [vmem:[%s1145_s0 + $0x60] ss:$12 sps:$4 sm:$0xff]  }
   0xd   :  { %v873_v35 = vld [vmem:[%s1145_s0 + $0x68] ss:$12 sps:$4 sm:$0xff]   ;;  %v875_v37 = vld [vmem:[%s1145_s0 + $0x80] ss:$12 sps:$4 sm:$0xff]   ;;  %v878_v39 = vld [vmem:[%s1145_s0 + $0x98] ss:$12 sps:$4 sm:$0xff]  }
   0xe   :  { %v876_v38 = vld [vmem:[%s1145_s0 + $0x7c] ss:$12 sps:$4 sm:$0xff]   ;;  %v879_v40 = vld [vmem:[%s1145_s0 + $0x78] ss:$12 sps:$4 sm:$0xff]   ;;  %v1054_v60 = vld [vmem:[%s1146_s2] ss:$0 sm:$0xff] }
   0xf   :  { %728 = vmatpush3.bf16.msra.mxu0 %v838_v7  ;;  %826 = vmatpush3.bf16.msra.mxu1 %v838_v7  ;;  %v880_v41 = vld [vmem:[%s1145_s0 + $0xb0] ss:$12 sps:$4 sm:$0xff]  }
  0x10   :  { %729 = vmatprep.subr.bf16.mxu0 %v839_v8  ;;  %819 = vmatprep.subr.bf16.mxu1 %v839_v8 }
  0x13   :  { %730 = vmatpush3.bf16.msra.mxu0 %v840_v9  ;;  %827 = vmatpush3.bf16.msra.mxu1 %v840_v9 }
  0x14   :  { %731 = vmatprep.subr.bf16.mxu0 %v841_v10  ;;  %820 = vmatprep.subr.bf16.mxu1 %v841_v10 }
  0x17   :  { %732 = vmatpush3.bf16.msra.mxu0 %v842_v13  ;;  %828 = vmatpush3.bf16.msra.mxu1 %v842_v13 }
  0x18   :  { %733 = vmatprep.subr.bf16.mxu0 %v843_v14  ;;  %821 = vmatprep.subr.bf16.mxu1 %v843_v14 }
  0x1b   :  { %734 = vmatpush3.bf16.msra.mxu0 %v844_v15  ;;  %829 = vmatpush3.bf16.msra.mxu1 %v844_v15 }
  0x1c   :  { %735 = vmatprep.subr.bf16.mxu0 %v845_v16  ;;  %822 = vmatprep.subr.bf16.mxu1 %v845_v16 }
  0x1f   :  { %736 = vmatpush3.bf16.msra.mxu0 %v846_v17  ;;  %830 = vmatpush3.bf16.msra.mxu1 %v846_v17 }
  0x20   :  { %795 = vmatprep.subr.bf16.mxu1 %v853_v19 }
  0x22   :  { %376 = vmatmul.mubr.bf16.vlgmr.msra.gmra.mxu0 %v847_v18  ;;  %424 = vmatmul.mubr.bf16.vlgmr.msra.gmra.mxu1 %v850_v20 }
  0x23   :  { %796 = vmatpush3.bf16.msra.mxu1 %v853_v19  ;;  %383 = vmatprep.mubr.bf16.mxu0 %v854_v21 }
  0x24   :  { %431 = vmatprep.mubr.bf16.mxu1 %v856_v22  ;;  %797 = vmatprep.subr.bf16.mxu1 %v860_v23 }
  0x27   :  { %798 = vmatpush3.bf16.msra.mxu1 %v860_v23 }
  0x2a   :  { %384 = vmatmul.mubr.bf16.gmra.mxu0 %v858_v24  ;;  %432 = vmatmul.mubr.bf16.gmra.mxu1 %v859_v25 }
  0x2b   :  { %391 = vmatprep.mubr.bf16.mxu0 %v861_v26  ;;  %799 = vmatprep.mubr.msk.bf16.mxu1 %vm318_vm0, %v863_v27 }
  0x32   :  { %392 = vmatmul.mubr.bf16.gmra.mxu0 %v864_v28  ;;  %800 = vmatmul.mubr.msk.bf16.vlgmr.msra.gmra.mxu1 %vm318_vm0, %v865_v29 }
  0x33   :  { %399 = vmatprep.mubr.bf16.mxu0 %v866_v30  ;;  %803 = vmatprep.mubr.msk.bf16.mxu1 %vm318_vm0, %v868_v31 }
  0x3a   :  { %400 = vmatmul.mubr.bf16.gmra.mxu0 %v869_v32  ;;  %804 = vmatmul.mubr.msk.bf16.gmra.mxu1 %vm318_vm0, %v870_v33 }
  0x3b   :  { %407 = vmatprep.mubr.bf16.mxu0 %v871_v34  ;;  %807 = vmatprep.mubr.msk.bf16.mxu1 %vm318_vm0, %v873_v35 }
  0x42   :  { %408 = vmatmul.mubr.bf16.gmra.mxu0 %v874_v36  ;;  %808 = vmatmul.mubr.msk.bf16.gmra.mxu1 %vm318_vm0, %v875_v37 }
  0x43   :  { %415 = vmatprep.mubr.bf16.mxu0 %v876_v38  ;;  %811 = vmatprep.mubr.msk.bf16.mxu1 %vm318_vm0, %v878_v39 }
  0x4a   :  { %416 = vmatmul.mubr.bf16.gmra.mxu0 %v879_v40  ;;  %812 = vmatmul.mubr.msk.bf16.gmra.mxu1 %vm318_vm0, %v880_v41 }
  0xe2   :  { %v737_v42 = vpop.f32.mrf.mxu0  ;;  %v1035_v43 = vpop.f32.mrf.mxu1 }
  0xe4   :  { %v738_v44 = vpop.f32.mrf.mxu0  ;;  %v1037_v45 = vpop.f32.mrf.mxu1 }
  0xe5   :  { %v739_v57 = vadd.f32 %v738_v44, %v737_v42 }
  0xe6   :  { %v740_v46 = vpop.f32.mrf.mxu0  ;;  %v1039_v47 = vpop.f32.mrf.mxu1 }
  0xe7   :  { %v378_v3 = vadd.f32 %v739_v57, %v1054_v60 }
  0xe8   :  { %v741_v48 = vpop.f32.mrf.mxu0  ;;  %v1041_v49 = vpop.f32.mrf.mxu1 }
  0xe9   :  { %v742_v63 = vadd.f32 %v741_v48, %v740_v46 }
  0xea   :  { %v743_v50 = vpop.f32.mrf.mxu0  ;;  %v1043_v51 = vpop.f32.mrf.mxu1 }
  0xeb   :  { %v381_v11 = vadd.f32 %v742_v63, %v1054_v60 }
  0xec   :  { %v744_v52 = vpop.f32.mrf.mxu0  ;;  %v1045_v53 = vpop.f32.mrf.mxu1 }
  0xed   :  { %v745_v54 = vadd.f32 %v744_v52, %v743_v50 }
  0xee   :  { %v746_v55 = vpop.f32.mrf.mxu0  ;;  %v1047_v56 = vpop.f32.mrf.mxu1 }
  0xef   :  { %v386_v62 = vadd.f32 %v745_v54, %v1054_v60  ;;  %v781_v54 = vadd.f32 %v1045_v53, %v1043_v51  ;;  %v775_v53 = vadd.f32 %v1037_v45, %v1035_v43 }
  0xf0   :  { %v747_v58 = vpop.f32.mrf.mxu0  ;;  %v1049_v59 = vpop.f32.mrf.mxu1 }
  0xf1   :  { %v748_v61 = vadd.f32 %v747_v58, %v746_v55 }
  0xf2   :  { %v749_v0 = vpop.f32.mrf.mxu0  ;;  %v801_v1 = vpop.f32.mrf.mxu1 }
  0xf3   :  { %v483_v2 = vadd.f32 %v801_v1, %v386_v62  ;;  %v389_v8 = vadd.f32 %v748_v61, %v1054_v60 }
  0xf4   :  { %v750_v4 = vpop.f32.mrf.mxu0  ;;  %v474_v5 = vpop.f32.mrf.mxu1 }
  0xf5   :  { %v539_v6 = vmax.f32 %v483_v2, 0.0  ;;  %v475_v7 = vadd.f32 %v474_v5, %v378_v3  ;;  %v751_v13 = vadd.f32 %v750_v4, %v749_v0  ;;  %v784_v3 = vadd.f32 %v1049_v59, %v1047_v56 }
  0xf6   :  { %v752_v9 = vpop.f32.mrf.mxu0  ;;  %v802_v10 = vpop.f32.mrf.mxu1  ;;  %v778_v56 = vadd.f32 %v1041_v49, %v1039_v47 }
  0xf7   :  { %v707_v12 = vpack.c.bf16 %v539_v6, %v539_v6  ;;  %v537_v14 = vmax.f32 %v475_v7, 0.0  ;;  %v486_v15 = vadd.f32 %v802_v10, %v389_v8  ;;  %v394_v26 = vadd.f32 %v751_v13, %v1054_v60 }
  0xf8   :  { %v753_v16 = vpop.f32.mrf.mxu0  ;;  %v477_v17 = vpop.f32.mrf.mxu1  ;;  %v426_v13 = vadd.f32 %v775_v53, %v1054_v60 }
  0xf9   :  { %620 = vst.msk [vmem:[%s1147_s3 + $0x8] sm:$0xf] %vm617_vm1, %v707_v12  ;;  %v705_v18 = vpack.c.bf16 %v537_v14, %v537_v14  ;;  %v540_v19 = vmax.f32 %v486_v15, 0.0  ;;  %v478_v20 = vadd.f32 %v477_v17, %v381_v11  ;;  %v754_v24 = vadd.f32 %v753_v16, %v752_v9 }
  0xfa   :  { %v755_v21 = vpop.f32.mrf.mxu0  ;;  %v805_v22 = vpop.f32.mrf.mxu1  ;;  %v434_v9 = vadd.f32 %v781_v54, %v1054_v60  ;;  %v437_v15 = vadd.f32 %v784_v3, %v1054_v60 }
  0xfb   :  { %618 = vst.msk [vmem:[%s1147_s3] sm:$0xf] %vm617_vm1, %v705_v18  ;;  %v708_v23 = vpack.c.bf16 %v540_v19, %v540_v19  ;;  %v538_v25 = vmax.f32 %v478_v20, 0.0  ;;  %v397_v36 = vadd.f32 %v754_v24, %v1054_v60 }
  0xfc   :  { %v756_v27 = vpop.f32.mrf.mxu0  ;;  %v490_v28 = vpop.f32.mrf.mxu1 }
  0xfd   :  { %621 = vst.msk [vmem:[%s1147_s3 + $0xc] sm:$0xf] %vm617_vm1, %v708_v23  ;;  %v706_v29 = vpack.c.bf16 %v538_v25, %v538_v25  ;;  %v757_v30 = vadd.f32 %v756_v27, %v755_v21  ;;  %v491_v31 = vadd.f32 %v490_v28, %v394_v26  ;;  %v429_v27 = vadd.f32 %v778_v56, %v1054_v60 }
  0xfe   :  { %v758_v32 = vpop.f32.mrf.mxu0  ;;  %v806_v33 = vpop.f32.mrf.mxu1 }
  0xff   :  { %619 = vst.msk [vmem:[%s1147_s3 + $0x4] sm:$0xf] %vm617_vm1, %v706_v29  ;;  %v402_v34 = vadd.f32 %v757_v30, %v1054_v60  ;;  %v541_v35 = vmax.f32 %v491_v31, 0.0 }
 0x100   :  { %v759_v37 = vpop.f32.mrf.mxu0  ;;  %v493_v38 = vpop.f32.mrf.mxu1 }
 0x101   :  { %v499_v39 = vadd.f32 %v805_v22, %v402_v34  ;;  %v709_v40 = vpack.c.bf16 %v541_v35, %v541_v35  ;;  %v760_v41 = vadd.f32 %v759_v37, %v758_v32  ;;  %v494_v42 = vadd.f32 %v493_v38, %v397_v36 }
 0x102   :  { %v761_v44 = vpop.f32.mrf.mxu0  ;;  %v809_v46 = vpop.f32.mrf.mxu1 }
 0x103   :  { %v543_v48 = vmax.f32 %v499_v39, 0.0  ;;  %622 = vst.msk [vmem:[%s1147_s3 + $0x10] sm:$0xf] %vm617_vm1, %v709_v40  ;;  %v405_v50 = vadd.f32 %v760_v41, %v1054_v60  ;;  %v542_v52 = vmax.f32 %v494_v42, 0.0 }
 0x104   :  { %v762_v55 = vpop.f32.mrf.mxu0  ;;  %v506_v57 = vpop.f32.mrf.mxu1 }
 0x105   :  { %v711_v58 = vpack.c.bf16 %v543_v48, %v543_v48  ;;  %v502_v61 = vadd.f32 %v806_v33, %v405_v50  ;;  %v710_v62 = vpack.c.bf16 %v542_v52, %v542_v52  ;;  %v763_v63 = vadd.f32 %v762_v55, %v761_v44 }
 0x106   :  { %v764_v0 = vpop.f32.mrf.mxu0  ;;  %v810_v1 = vpop.f32.mrf.mxu1 }
 0x107   :  { %624 = vst.msk [vmem:[%s1147_s3 + $0x18] sm:$0xf] %vm617_vm1, %v711_v58  ;;  %v544_v2 = vmax.f32 %v502_v61, 0.0  ;;  %623 = vst.msk [vmem:[%s1147_s3 + $0x14] sm:$0xf] %vm617_vm1, %v710_v62  ;;  %v410_v51 = vadd.f32 %v763_v63, %v1054_v60 }
 0x108   :  { %v765_v4 = vpop.f32.mrf.mxu0  ;;  %v509_v5 = vpop.f32.mrf.mxu1 }
 0x109   :  { %v712_v6 = vpack.c.bf16 %v544_v2, %v544_v2  ;;  %v507_v7 = vadd.f32 %v506_v57, %v410_v51  ;;  %v766_v8 = vadd.f32 %v765_v4, %v764_v0 }
 0x10a   :  { %v767_v10 = vpop.f32.mrf.mxu0  ;;  %v813_v11 = vpop.f32.mrf.mxu1 }
 0x10b   :  { %625 = vst.msk [vmem:[%s1147_s3 + $0x1c] sm:$0xf] %vm617_vm1, %v712_v6  ;;  %v545_v12 = vmax.f32 %v507_v7, 0.0  ;;  %v413_v43 = vadd.f32 %v766_v8, %v1054_v60  ;;  %v531_v45 = vadd.f32 %v813_v11, %v434_v9 }
 0x10c   :  { %v768_v59 = vpop.f32.mrf.mxu0  ;;  %v522_v14 = vpop.f32.mrf.mxu1 }
 0x10d   :  { %v713_v16 = vpack.c.bf16 %v545_v12, %v545_v12  ;;  %v510_v17 = vadd.f32 %v509_v5, %v413_v43  ;;  %v551_v18 = vmax.f32 %v531_v45, 0.0  ;;  %v769_v19 = vadd.f32 %v768_v59, %v767_v10 }
 0x10e   :  { %v523_v20 = vadd.f32 %v522_v14, %v426_v13  ;;  %v770_v21 = vpop.f32.mrf.mxu0  ;;  %v814_v22 = vpop.f32.mrf.mxu1 }
 0x10f   :  { %626 = vst.msk [vmem:[%s1147_s3 + $0x20] sm:$0xf] %vm617_vm1, %v713_v16  ;;  %v546_v23 = vmax.f32 %v510_v17, 0.0  ;;  %v719_v47 = vpack.c.bf16 %v551_v18, %v551_v18  ;;  %v418_v49 = vadd.f32 %v769_v19, %v1054_v60  ;;  %v534_v24 = vadd.f32 %v814_v22, %v437_v15 }
 0x110   :  { %v549_v25 = vmax.f32 %v523_v20, 0.0  ;;  %v771_v26 = vpop.f32.mrf.mxu0  ;;  %v525_v28 = vpop.f32.mrf.mxu1 }
 0x111   :  { %v714_v29 = vpack.c.bf16 %v546_v23, %v546_v23  ;;  %632 = vst.msk [vmem:[%s1147_s3 + $0x38] sm:$0xf] %vm617_vm1, %v719_v47  ;;  %v515_v30 = vadd.f32 %v809_v46, %v418_v49  ;;  %v552_v31 = vmax.f32 %v534_v24, 0.0  ;;  %v772_v32 = vadd.f32 %v771_v26, %v770_v21 }
 0x112   :  { %v717_v33 = vpack.c.bf16 %v549_v25, %v549_v25  ;;  %v526_v34 = vadd.f32 %v525_v28, %v429_v27 }
 0x113   :  { %627 = vst.msk [vmem:[%s1147_s3 + $0x24] sm:$0xf] %vm617_vm1, %v714_v29  ;;  %v547_v35 = vmax.f32 %v515_v30, 0.0  ;;  %v720_v36 = vpack.c.bf16 %v552_v31, %v552_v31  ;;  %v421_v37 = vadd.f32 %v772_v32, %v1054_v60 }
 0x114   :  { %630 = vst.msk [vmem:[%s1147_s3 + $0x30] sm:$0xf] %vm617_vm1, %v717_v33  ;;  %v550_v38 = vmax.f32 %v526_v34, 0.0 }
 0x115   :  { %v715_v39 = vpack.c.bf16 %v547_v35, %v547_v35  ;;  %633 = vst.msk [vmem:[%s1147_s3 + $0x3c] sm:$0xf] %vm617_vm1, %v720_v36  ;;  %v518_v40 = vadd.f32 %v810_v1, %v421_v37 }
 0x116   :  { %v718_v41 = vpack.c.bf16 %v550_v38, %v550_v38 }
 0x117   :  { %628 = vst.msk [vmem:[%s1147_s3 + $0x28] sm:$0xf] %vm617_vm1, %v715_v39  ;;  %v548_v60 = vmax.f32 %v518_v40, 0.0 }
 0x118   :  { %631 = vst.msk [vmem:[%s1147_s3 + $0x34] sm:$0xf] %vm617_vm1, %v718_v41 }
 0x119   :  { %v716_v42 = vpack.c.bf16 %v548_v60, %v548_v60 }
 0x11b   :  { %629 = vst.msk [vmem:[%s1147_s3 + $0x2c] sm:$0xf] %vm617_vm1, %v716_v42 }

// kernel: conv2d_subsampling8_forward.6
= control target key start
LH: loop header
LB: loop body
LE: loop exit
PB: predicated region body
PF: predicated region fallthrough
CT: control target
= control target key end

     0   :  { %vm197_vm0 = vcmask 261120   ;;  %vm316_vm1 = vcmask 257024   ;;  %s526_s1 = inlined_call_operand.vmem [shape: bf16[288,32], index: 1, kind: input, shape index: {}]   ;;  %s527_s0 = inlined_call_operand.vmem [shape: bf16[24,288], index: 0, kind: input, shape index: {}]   ;;  %s528_s2 = inlined_call_operand.vmem [shape: f32[1,32], index: 2, kind: input, shape index: {}]   ;;  %s529_s3 = inlined_call_operand.vmem [shape: bf16[24,32], index: 3, kind: output, shape index: {}]  }
   0x1   :  { %v397_v0 = vld [vmem:[%s526_s1 + $0x78] sm:$0xff]   ;;  %v399_v2 = vld [vmem:[%s526_s1 + $0x70] sm:$0xff]   ;;  %v401_v4 = vld [vmem:[%s526_s1 + $0x68] sm:$0xff]  }
   0x2   :  { %v398_v1 = vld [vmem:[%s526_s1 + $0x38] sm:$0xff]   ;;  %357 = vmatprep.subr.bf16.mxu0 %v397_v0  ;;  %v400_v3 = vld [vmem:[%s526_s1 + $0x30] sm:$0xff]   ;;  %v402_v5 = vld [vmem:[%s526_s1 + $0x28] sm:$0xff]  }
   0x3   :  { %358 = vmatpush3.bf16.msra.mxu0 %v398_v1  ;;  %v403_v6 = vld [vmem:[%s526_s1 + $0x60] sm:$0xff]   ;;  %v405_v8 = vld [vmem:[%s526_s1 + $0x58] sm:$0xff]   ;;  %v411_v9 = vld [vmem:[%s526_s1 + $0x88] sm:$0xff]  }
   0x4   :  { %359 = vmatprep.subr.bf16.mxu0 %v399_v2  ;;  %v404_v7 = vld [vmem:[%s526_s1 + $0x20] sm:$0xff]   ;;  %v406_v10 = vld [vmem:[%s526_s1 + $0x18] sm:$0xff]   ;;  %v407_v11 = vld [vmem:[%s526_s1 + $0x50] sm:$0xff]   ;;  %389 = vmatprep.subr.bf16.mxu1 %v411_v9 }
   0x5   :  { %v408_v12 = vld [vmem:[%s526_s1 + $0x10] sm:$0xff]   ;;  %390 = vmatpush3.bf16.msra.mxu1 %v411_v9  ;;  %v414_v13 = vld [vmem:[%s526_s1 + $0x80] sm:$0xff]   ;;  %v409_v14 = vld [vmem:[%s526_s1 + $0x48] sm:$0xff]  }
   0x6   :  { %391 = vmatprep.subr.bf16.mxu1 %v414_v13  ;;  %v417_v15 = vld [vmem:[%s527_s0 + $0x4] ss:$12 sps:$4 sm:$0xff]   ;;  %v418_v16 = vld [vmem:[%s527_s0 + $0x8] ss:$12 sps:$4 sm:$0xff]   ;;  %v419_v17 = vld [vmem:[%s527_s0 + $0x20] ss:$0 sps:$4 sm:$0xff]  }
   0x7   :  { %360 = vmatpush3.bf16.msra.mxu0 %v400_v3  ;;  %236 = vmatprep.mubr.bf16.mxu0 %v417_v15  ;;  %v410_v18 = vld [vmem:[%s526_s1 + $0x8] sm:$0xff]   ;;  %v412_v19 = vld [vmem:[%s526_s1 + $0x40] sm:$0xff]   ;;  %v19_v21 = vld [vmem:[%s527_s0 + $0x18] sm:$0xff] }
   0x8   :  { %361 = vmatprep.subr.bf16.mxu0 %v401_v4  ;;  %393 = vmatprep.mubr.msk.bf16.mxu1 %vm197_vm0, %v418_v16  ;;  %v413_v20 = vld [vmem:[%s526_s1] sm:$0xff]   ;;  %v329_v23 = vcombine.high %v19_v21, %v19_v21  ;;  %v328_v24 = vcombine.low %v19_v21, %v19_v21 }
   0x9   :  { %392 = vmatpush3.bf16.msra.mxu1 %v414_v13  ;;  %v415_v22 = vld [vmem:[%s527_s0] ss:$12 sps:$4 sm:$0xff]  }
   0xa   :  { %v324_v30 = vld [vmem:[%s528_s2] ss:$0 sm:$0xff] }
   0xb   :  { %362 = vmatpush3.bf16.msra.mxu0 %v402_v5 }
   0xc   :  { %363 = vmatprep.subr.bf16.mxu0 %v403_v6  ;;  %394 = vmatmul.mubr.msk.bf16.vlgmr.msra.gmra.mxu1 %vm197_vm0, %v419_v17 }
   0xf   :  { %364 = vmatpush3.bf16.msra.mxu0 %v404_v7 }
  0x10   :  { %365 = vmatprep.subr.bf16.mxu0 %v405_v8 }
  0x13   :  { %366 = vmatpush3.bf16.msra.mxu0 %v406_v10 }
  0x14   :  { %367 = vmatprep.subr.bf16.mxu0 %v407_v11 }
  0x17   :  { %368 = vmatpush3.bf16.msra.mxu0 %v408_v12 }
  0x18   :  { %369 = vmatprep.subr.bf16.mxu0 %v409_v14 }
  0x1b   :  { %370 = vmatpush3.bf16.msra.mxu0 %v410_v18 }
  0x1c   :  { %371 = vmatprep.subr.bf16.mxu0 %v412_v19 }
  0x1f   :  { %372 = vmatpush3.bf16.msra.mxu0 %v413_v20 }
  0x22   :  { %237 = vmatmul.mubr.bf16.vlgmr.msra.gmra.mxu0 %v415_v22 }
  0x23   :  { %244 = vmatprep.mubr.bf16.mxu0 %v329_v23 }
  0x2a   :  { %245 = vmatmul.mubr.bf16.gmra.mxu0 %v328_v24 }
  0xcc   :  { %v395_v25 = vpop.f32.mrf.mxu1 }
  0xce   :  { %v286_v26 = vpop.f32.mrf.mxu1 }
  0xd0   :  { %v396_v27 = vpop.f32.mrf.mxu1 }
  0xd2   :  { %v289_v40 = vpop.f32.mrf.mxu1 }
  0xe2   :  { %v373_v28 = vpop.f32.mrf.mxu0 }
  0xe4   :  { %v374_v29 = vpop.f32.mrf.mxu0 }
  0xe5   :  { %v375_v31 = vadd.f32 %v374_v29, %v373_v28 }
  0xe6   :  { %v376_v32 = vpop.f32.mrf.mxu0 }
  0xe7   :  { %v239_v33 = vadd.f32 %v375_v31, %v324_v30 }
  0xe8   :  { %v377_v34 = vpop.f32.mrf.mxu0 }
  0xe9   :  { %v287_v35 = vadd.f32 %v286_v26, %v239_v33  ;;  %v378_v36 = vadd.f32 %v377_v34, %v376_v32 }
  0xea   :  { %v379_v37 = vpop.f32.mrf.mxu0 }
  0xeb   :  { %v300_v38 = vmax.f32 %v287_v35, 0.0  ;;  %v242_v39 = vadd.f32 %v378_v36, %v324_v30 }
  0xec   :  { %v380_v41 = vpop.f32.mrf.mxu0 }
  0xed   :  { %v354_v42 = vpack.c.bf16 %v300_v38, %v300_v38  ;;  %v290_v43 = vadd.f32 %v289_v40, %v242_v39  ;;  %v381_v44 = vadd.f32 %v380_v41, %v379_v37 }
  0xee   :  { %v382_v45 = vpop.f32.mrf.mxu0 }
  0xef   :  { %317 = vst.msk [vmem:[%s529_s3] sm:$0xf] %vm316_vm1, %v354_v42  ;;  %v301_v46 = vmax.f32 %v290_v43, 0.0  ;;  %v247_v47 = vadd.f32 %v381_v44, %v324_v30 }
  0xf0   :  { %v383_v48 = vpop.f32.mrf.mxu0 }
  0xf1   :  { %v355_v49 = vpack.c.bf16 %v301_v46, %v301_v46  ;;  %v295_v50 = vadd.f32 %v395_v25, %v247_v47 }
  0xf3   :  { %318 = vst.msk [vmem:[%s529_s3 + $0x4] sm:$0xf] %vm316_vm1, %v355_v49  ;;  %v302_v51 = vmax.f32 %v295_v50, 0.0 }
  0xf5   :  { %v356_v52 = vpack.c.bf16 %v302_v51, %v302_v51 }
  0xf7   :  { %319 = vst.msk [vmem:[%s529_s3 + $0x8] sm:$0xf] %vm316_vm1, %v356_v52 }

// kernel: conv2d_subsampling8_forward.7
= control target key start
LH: loop header
LB: loop body
LE: loop exit
PB: predicated region body
PF: predicated region fallthrough
CT: control target
= control target key end

     0   :  { %s582_s15 = smov 0   ;;  %s584_s16 = smov 0   ;;  %s649_s0 = inlined_call_operand.vmem [shape: bf16[2,8,128], index: 0, kind: input, shape index: {}]   ;;  %s650_s1 = inlined_call_operand.vmem [shape: bf16[128,32], index: 1, kind: input, shape index: {}]   ;;  %s651_s2 = inlined_call_operand.vmem [shape: f32[1,32], index: 2, kind: input, shape index: {}]   ;;  %s652_s3 = inlined_call_operand.vmem [shape: f32[8,32], index: 3, kind: input, shape index: {}]   ;;  %s653_s4 = inlined_call_operand.vmem [shape: f32[2,8,32], index: 4, kind: output, shape index: {}]  }
   0x1   :  { %s586_s17 = smov 0  }
   0x2 LB: > { %s26_s18 = sadd.s32 1, %s549_s16  ;;  %p454_p0 = scmp.ge.s32.totalorder %s553_s17, 1  ;;  %s553_s17 = sphi %s586_s17, %s14_s17   ;;  %s549_s16 = sphi %s584_s16, %s655_s16   ;;  %s545_s15 = sphi %s582_s15, %s654_s15  }
   0x3   : > { %p28_p1 = scmp.ge.s32.totalorder %s26_s18, 2  ;;  %p189_p2 = scmp.lt.s32.totalorder %s553_s17, 3 }
   0x5   : > { %s657_s18 = smov (%p28_p1, %s26_s18), 0  ;;  %p190_p3 = pnand %p454_p0, %p189_p2 }
   0x6   : > { %p223_p4 = scmp.lt.s32.totalorder (!%p190_p3), %s545_s15, 1 }
   0x7   : > { %193 = sbr.rel (%p190_p3) target bundleno = 245 (0xf5), region = 36 }
   0xc   : > { %v523_v0 = vld [vmem:[%s650_s1 + $0x38] sm:$0xff]   ;;  %v555_v1 = vmov 0.0   ;;  %v524_v2 = vld [vmem:[%s650_s1 + $0x30] sm:$0xff]   ;;  %vm556_vm0 = vmmov 0   ;;  %v525_v3 = vld [vmem:[%s650_s1 + $0x28] sm:$0xff]   ;;  %s659_s15 = smov (!%p223_p4, %s545_s15), 1 }
   0xd   : > { %477 = vmatprep.subr.bf16.mxu0 %v555_v1  ;;  %493 = vmatprep.mubr.msk.bf16.mxu0 %vm556_vm0, %v555_v1  ;;  %v526_v4 = vld [vmem:[%s650_s1 + $0x20] sm:$0xff]   ;;  %v527_v5 = vld [vmem:[%s650_s1 + $0x18] sm:$0xff]   ;;  %v528_v6 = vld [vmem:[%s650_s1 + $0x10] sm:$0xff]   ;;  %s455_s7 = sshll.u32 %s659_s15, 2  ;;  %s456_s19 = sshll.u32 %s659_s15, 3  ;;  %vm357_vm1 = vcmask 261120  }
   0xe   : > { %478 = vmatpush3.bf16.msra.mxu0 %v523_v0  ;;  %v529_v7 = vld [vmem:[%s650_s1 + $0x8] sm:$0xff]   ;;  %v530_v8 = vld [vmem:[%s650_s1] sm:$0xff]   ;;  %s229_s12 = scalar_lea.vmem %s649_s0, %s455_s7  ;;  %s240_s24 = scalar_lea.vmem %s653_s4, %s456_s19 }
   0xf   : > { %479 = vmatprep.subr.bf16.mxu0 %v555_v1  ;;  %v242_v9 = vld [vmem:[%s229_s12] sm:$0xf] }
  0x10   : > { %v457_v10 = vld [vmem:[%s651_s2] ss:$0 sm:$0xff] }
  0x11   : > { %v355_v13 = vld [vmem:[%s652_s3] sm:$0xff] }
  0x12   : > { %480 = vmatpush3.bf16.msra.mxu0 %v524_v2 }
  0x13   : > { %481 = vmatprep.subr.bf16.mxu0 %v555_v1 }
  0x16   : > { %482 = vmatpush3.bf16.msra.mxu0 %v525_v3 }
  0x17   : > { %483 = vmatprep.subr.bf16.mxu0 %v555_v1 }
  0x1a   : > { %484 = vmatpush3.bf16.msra.mxu0 %v526_v4 }
  0x1b   : > { %485 = vmatprep.subr.bf16.mxu0 %v555_v1 }
  0x1e   : > { %486 = vmatpush3.bf16.msra.mxu0 %v527_v5 }
  0x1f   : > { %487 = vmatprep.subr.bf16.mxu0 %v555_v1 }
  0x22   : > { %488 = vmatpush3.bf16.msra.mxu0 %v528_v6 }
  0x23   : > { %489 = vmatprep.subr.bf16.mxu0 %v555_v1 }
  0x26   : > { %490 = vmatpush3.bf16.msra.mxu0 %v529_v7 }
  0x27   : > { %491 = vmatprep.subr.bf16.mxu0 %v555_v1 }
  0x2a   : > { %492 = vmatpush3.bf16.msra.mxu0 %v530_v8 }
  0x2d   : > { %494 = vmatmul.mubr.bf16.vlgmr.msra.gmra.mxu0 %v242_v9 }
  0xed   : > { %v348_v11 = vpop.f32.mrf.mxu0 }
  0xee   : > { %v349_v12 = vadd.f32 %v457_v10, %v348_v11 }
  0xef   : > { %v495_v14 = vpop.f32.mrf.mxu0 }
  0xf0   : > { %v354_v15 = vmul.f32 5.656854, %v349_v12 }
  0xf1   : > { %v351_v16 = vpop.f32.mrf.mxu0 }
  0xf2   : > { %v356_v17 = vadd.f32 %v355_v13, %v354_v15 }
  0xf3   : > { %v496_v18 = vpop.f32.mrf.mxu0 }
  0xf4   : > { %358 = vst.msk [vmem:[%s240_s24] sm:$0xff] %vm357_vm1, %v356_v17 }
  0xf5 PF: > { %s14_s17 = sadd.s32 1, %s553_s17   ;;  %s654_s15 = smov %s549_s16 }
  0xf6   : > { %p11_p5 = scmp.ge.s32.totalorder %s14_s17, 4   ;;  %s655_s16 = smov %s657_s18 }
  0xf8   :  { %13 = sbr.rel (!%p11_p5) target bundleno = 2 (0x2), region = 69 }

</bundles_post_ra>
